<compile_context>
chip_gen: v5e
topology: v5e:2x2
jax: 0.10.0
libtpu: 0.0.40
codegen_flags: <defaults>
</compile_context>

<pallas_src>
import jax
import jax.numpy as jnp
from jax import lax
from jax.experimental import pallas as pl
from jax.experimental.pallas import tpu as pltpu

EPS = 1e-5


# ---------------- in-kernel helpers (traced inside the Pallas kernel) ----------------

def _depthwise(xp, w, b):
    # Depthwise Conv1d.  xp: (B, C, Lin) already zero-padded along L (lanes);
    # w: (K, C, 1)  [torch weight (C,1,K) transposed]; b: (C, 1).
    # Returns (B, C, Lin - K + 1):  out[:, :, j] = sum_k w[k] * xp[:, :, j + k] + b.
    K = w.shape[0]
    Lout = xp.shape[2] - (K - 1)
    acc = None
    for k in range(K):                         # K is tiny & static -> unrolled VPU FMAs
        term = xp[:, :, k:k + Lout] * w[k]     # lane-shifted slice * per-channel weight
        acc = term if acc is None else acc + term
    return acc + b


def _pointwise(x, w, b):
    # 1x1 Conv1d as an unrolled sum of per-input-channel VPU FMAs (channel counts
    # << 128, so this beats a (C,D)-tiny MXU matmul and needs no transposes).
    # x: (B, C, Lx); w: (C, D, 1)  [torch weight (D,C,1) transposed]; b: (D, 1).
    C = x.shape[1]
    acc = None
    for c in range(C):
        term = x[:, c:c + 1, :] * w[c]         # (B,1,Lx) * (D,1) -> (B, D, Lx)
        acc = term if acc is None else acc + term
    return acc + b


def _bn_relu(h, gamma, beta, count, mask=None):
    # Training-mode BatchNorm1d + ReLU with fused single-pass sum/sumsq statistics
    # over (B, L).  `mask` is a float (1, 1, Lh) selector of the real (non-halo)
    # columns; `count` = B * L (true element count per channel).
    if mask is not None:
        h = h * mask                                      # halo columns -> 0 for stats
    s = jnp.sum(jnp.sum(h, axis=2, keepdims=True), axis=0, keepdims=True)       # (1,C,1)
    ss = jnp.sum(jnp.sum(h * h, axis=2, keepdims=True), axis=0, keepdims=True)  # (1,C,1)
    inv_n = 1.0 / count
    mean = s * inv_n
    var = ss * inv_n - mean * mean                        # biased variance
    scale = lax.rsqrt(var + EPS) * gamma                  # rsqrt rides the EUP slot
    y = jnp.maximum((h - mean) * scale + beta, 0.0)
    if mask is not None:
        y = y * mask                                      # keep halo columns exactly 0
    return y


# --------------------------------- Pallas kernel --------------------------------------

def resblock_kernel(x_ref, xpad_ref,
                    dw1_w_ref, dw1_b_ref, g_dw1_ref, b_dw1_ref,
                    pw1_w_ref, pw1_b_ref, g_bn1_ref, b_bn1_ref,
                    dw2_w_ref, dw2_b_ref, g_dw2_ref, b_dw2_ref,
                    pw2_w_ref, pw2_b_ref, g_bn2_ref, b_bn2_ref,
                    skip_w_ref, skip_b_ref,
                    out_ref):
    # Layout: channels-first (B, C, L); L sits on lanes.  All static sizes are derived
    # from the ref shapes.
    x = x_ref[...]                                        # (B, Cin, L)
    B, _, L = x.shape
    K = dw1_w_ref.shape[0]
    pad = (K - 1) // 2
    Lh = L + 2 * pad                                      # layer-1 activations keep a halo
    count = float(B * L)

    # 0/1 mask over the halo-padded length: 1.0 on the L real columns, 0.0 on the halo.
    lane = lax.broadcasted_iota(jnp.int32, (1, 1, Lh), 2)
    mask = jnp.logical_and(lane >= pad, lane < pad + L).astype(jnp.float32)

    # ---- layer1 = ConvBnActivation(Cin -> Cmid), computed at halo length Lh ----
    h = _depthwise(xpad_ref[...], dw1_w_ref[...], dw1_b_ref[...])      # (B, Cin, Lh)
    h = _bn_relu(h, g_dw1_ref[...], b_dw1_ref[...], count, mask)
    h = _pointwise(h, pw1_w_ref[...], pw1_b_ref[...])                  # (B, Cmid, Lh)
    h = _bn_relu(h, g_bn1_ref[...], b_bn1_ref[...], count, mask)

    # ---- layer2 = ConvBnActivation(Cmid -> Cout) ----
    # h's zero halo columns provide dw2's zero padding; its output is exactly length L.
    h = _depthwise(h, dw2_w_ref[...], dw2_b_ref[...])                  # (B, Cmid, L)
    h = _bn_relu(h, g_dw2_ref[...], b_dw2_ref[...], count)
    h = _pointwise(h, pw2_w_ref[...], pw2_b_ref[...])                  # (B, Cout, L)
    h = _bn_relu(h, g_bn2_ref[...], b_bn2_ref[...], count)

    # ---- residual skip: 1x1 conv on the original (unpadded) input ----
    skip = _pointwise(x, skip_w_ref[...], skip_b_ref[...])             # (B, Cout, L)
    out_ref[...] = (h + skip).astype(out_ref.dtype)


_PARAM_ORDER = ["dw1_w", "dw1_b", "g_dw1", "b_dw1",
                "pw1_w", "pw1_b", "g_bn1", "b_bn1",
                "dw2_w", "dw2_b", "g_dw2", "b_dw2",
                "pw2_w", "pw2_b", "g_bn2", "b_bn2",
                "skip_w", "skip_b"]


def resblock_forward(x_ncl, params, kernel_size):
    """x_ncl: (B, Cin, L) float32, PyTorch Conv1d NCL convention (no transposes needed)."""
    B, Cin, L = x_ncl.shape
    K = kernel_size
    pad = (K - 1) // 2
    Cout = params["pw2_w"].shape[1]

    x = x_ncl.astype(jnp.float32)
    # Zero-pad by 2*pad per side so BOTH depthwise convs inside the kernel are plain
    # static lane-shifted slices (no in-kernel concatenate / roll needed).
    xpad = jnp.pad(x, ((0, 0), (0, 0), (2 * pad, 2 * pad)))

    args = [x, xpad] + [params[name] for name in _PARAM_ORDER]

    return pl.pallas_call(
        resblock_kernel,
        out_shape=jax.ShapeDtypeStruct((B, Cout, L), jnp.float32),
        in_specs=[pl.BlockSpec(memory_space=pltpu.MemorySpace.VMEM)] * len(args),
        out_specs=pl.BlockSpec(memory_space=pltpu.MemorySpace.VMEM),
    )(*args)


# ----------------------------- pure-JAX reference --------------------------------------

def ref_forward(x_ncl, params, kernel_size):
    K = kernel_size
    pad = (K - 1) // 2
    x = x_ncl.astype(jnp.float32)
    L = x.shape[2]

    def dwconv(h, w, b):                       # w: (K, C, 1), b: (C, 1)
        hp = jnp.pad(h, ((0, 0), (0, 0), (pad, pad)))
        acc = 0.0
        for k in range(K):
            acc = acc + hp[:, :, k:k + L] * w[k]
        return acc + b

    def bn_relu(h, g, bt):
        mean = jnp.mean(h, axis=(0, 2), keepdims=True)
        var = jnp.mean(jnp.square(h - mean), axis=(0, 2), keepdims=True)
        return jnp.maximum((h - mean) * lax.rsqrt(var + EPS) * g + bt, 0.0)

    def pw(h, w, b):                           # w: (C, D, 1), b: (D, 1)
        return jnp.sum(h[:, :, None, :] * w[None, :, :, :], axis=1) + b

    h = dwconv(x, params["dw1_w"], params["dw1_b"])
    h = bn_relu(h, params["g_dw1"], params["b_dw1"])
    h = pw(h, params["pw1_w"], params["pw1_b"])
    h = bn_relu(h, params["g_bn1"], params["b_bn1"])
    h = dwconv(h, params["dw2_w"], params["dw2_b"])
    h = bn_relu(h, params["g_dw2"], params["b_dw2"])
    h = pw(h, params["pw2_w"], params["pw2_b"])
    h = bn_relu(h, params["g_bn2"], params["b_bn2"])
    return h + pw(x, params["skip_w"], params["skip_b"])


# ------------------------------- parameter init ----------------------------------------

def init_params(key, Cin, Cmid, Cout, K):
    ks = jax.random.split(key, 18)
    n = lambda k, shape, s=0.2: s * jax.random.normal(k, shape, jnp.float32)
    return {
        # layer1 depthwise Conv1d(Cin,Cin,K,groups=Cin): torch weight (Cin,1,K) -> (K,Cin,1)
        "dw1_w": n(ks[0], (K, Cin, 1)),   "dw1_b": n(ks[1], (Cin, 1)),
        # layer1 inner BatchNorm1d(Cin)
        "g_dw1": 1.0 + n(ks[2], (Cin, 1), 0.1), "b_dw1": n(ks[3], (Cin, 1), 0.1),
        # layer1 pointwise Conv1d(Cin,Cmid,1): torch weight (Cmid,Cin,1) -> (Cin,Cmid,1)
        "pw1_w": n(ks[4], (Cin, Cmid, 1)), "pw1_b": n(ks[5], (Cmid, 1)),
        # layer1 outer BatchNorm1d(Cmid)
        "g_bn1": 1.0 + n(ks[6], (Cmid, 1), 0.1), "b_bn1": n(ks[7], (Cmid, 1), 0.1),
        # layer2 (Cmid -> Cout)
        "dw2_w": n(ks[8], (K, Cmid, 1)),  "dw2_b": n(ks[9], (Cmid, 1)),
        "g_dw2": 1.0 + n(ks[10], (Cmid, 1), 0.1), "b_dw2": n(ks[11], (Cmid, 1), 0.1),
        "pw2_w": n(ks[12], (Cmid, Cout, 1)), "pw2_b": n(ks[13], (Cout, 1)),
        "g_bn2": 1.0 + n(ks[14], (Cout, 1), 0.1), "b_bn2": n(ks[15], (Cout, 1), 0.1),
        # skip Conv1d(Cin,Cout,1): torch weight (Cout,Cin,1) -> (Cin,Cout,1)
        "skip_w": n(ks[16], (Cin, Cout, 1)), "skip_b": n(ks[17], (Cout, 1)),
    }


if __name__ == "__main__":
    # Small shapes; L = 128 keeps the lane axis dense (full-width stores).
    B, Cin, Cmid, Cout, L, K = 2, 4, 8, 4, 128, 3
    kx, kp = jax.random.split(jax.random.PRNGKey(0))
    x = jax.random.normal(kx, (B, Cin, L), jnp.float32)
    params = init_params(kp, Cin, Cmid, Cout, K)

    y = jax.block_until_ready(resblock_forward(x, params, K))

    y_ref = jax.block_until_ready(ref_forward(x, params, K))
    assert y.shape == (B, Cout, L), y.shape
    assert bool(jnp.allclose(y, y_ref, atol=2e-3, rtol=2e-3)), \
        float(jnp.max(jnp.abs(y - y_ref)))
    print("KERNEL_OK")
</pallas_src>

<mosaic_0001>
module attributes {stable_mosaic.version = 11 : i64} {
  func.func @resblock_kernel(%arg0: memref<2x4x128xf32, #tpu.memory_space<vmem>>, %arg1: memref<2x4x132xf32, #tpu.memory_space<vmem>>, %arg2: memref<3x4x1xf32, #tpu.memory_space<vmem>>, %arg3: memref<4x1xf32, #tpu.memory_space<vmem>>, %arg4: memref<4x1xf32, #tpu.memory_space<vmem>>, %arg5: memref<4x1xf32, #tpu.memory_space<vmem>>, %arg6: memref<4x8x1xf32, #tpu.memory_space<vmem>>, %arg7: memref<8x1xf32, #tpu.memory_space<vmem>>, %arg8: memref<8x1xf32, #tpu.memory_space<vmem>>, %arg9: memref<8x1xf32, #tpu.memory_space<vmem>>, %arg10: memref<3x8x1xf32, #tpu.memory_space<vmem>>, %arg11: memref<8x1xf32, #tpu.memory_space<vmem>>, %arg12: memref<8x1xf32, #tpu.memory_space<vmem>>, %arg13: memref<8x1xf32, #tpu.memory_space<vmem>>, %arg14: memref<8x4x1xf32, #tpu.memory_space<vmem>>, %arg15: memref<4x1xf32, #tpu.memory_space<vmem>>, %arg16: memref<4x1xf32, #tpu.memory_space<vmem>>, %arg17: memref<4x1xf32, #tpu.memory_space<vmem>>, %arg18: memref<4x4x1xf32, #tpu.memory_space<vmem>>, %arg19: memref<4x1xf32, #tpu.memory_space<vmem>>, %arg20: memref<2x4x128xf32, #tpu.memory_space<vmem>>) attributes {dimension_semantics = [], scalar_prefetch = 0 : i64, scratch_operands = 0 : i64, tpu.core_type = #tpu.core_type<tc>} {
    %c0 = arith.constant 0 : index
    %c0_0 = arith.constant 0 : index
    %c0_1 = arith.constant 0 : index
    %0 = vector.load %arg0[%c0, %c0_0, %c0_1] : memref<2x4x128xf32, #tpu.memory_space<vmem>>, vector<2x4x128xf32>
    %1 = tpu.iota {dimensions = array<i32: 2>} : vector<1x1x130xi32>
    %c1_i32 = arith.constant 1 : i32
    %2 = vector.broadcast %c1_i32 : i32 to vector<1x1x130xi32>
    %3 = arith.cmpi sge, %1, %2 : vector<1x1x130xi32>
    %c129_i32 = arith.constant 129 : i32
    %4 = vector.broadcast %c129_i32 : i32 to vector<1x1x130xi32>
    %5 = arith.cmpi slt, %1, %4 : vector<1x1x130xi32>
    %6 = arith.andi %3, %5 : vector<1x1x130xi1>
    %7 = arith.extui %6 : vector<1x1x130xi1> to vector<1x1x130xi32>
    %8 = arith.sitofp %7 : vector<1x1x130xi32> to vector<1x1x130xf32>
    %c0_2 = arith.constant 0 : index
    %c0_3 = arith.constant 0 : index
    %c0_4 = arith.constant 0 : index
    %9 = vector.load %arg1[%c0_2, %c0_3, %c0_4] : memref<2x4x132xf32, #tpu.memory_space<vmem>>, vector<2x4x132xf32>
    %c0_5 = arith.constant 0 : index
    %c0_6 = arith.constant 0 : index
    %c0_7 = arith.constant 0 : index
    %10 = vector.load %arg2[%c0_5, %c0_6, %c0_7] : memref<3x4x1xf32, #tpu.memory_space<vmem>>, vector<3x4x1xf32>
    %c0_8 = arith.constant 0 : index
    %c0_9 = arith.constant 0 : index
    %11 = vector.load %arg3[%c0_8, %c0_9] : memref<4x1xf32, #tpu.memory_space<vmem>>, vector<4x1xf32>
    %12 = vector.extract_strided_slice %9 {offsets = [0, 0, 0], sizes = [2, 4, 130], strides = [1, 1, 1]} : vector<2x4x132xf32> to vector<2x4x130xf32>
    %13 = vector.extract_strided_slice %10 {offsets = [0, 0, 0], sizes = [1, 4, 1], strides = [1, 1, 1]} : vector<3x4x1xf32> to vector<1x4x1xf32>
    %14 = vector.shape_cast %13 : vector<1x4x1xf32> to vector<4x1xf32>
    %15 = vector.shape_cast %14 : vector<4x1xf32> to vector<1x4x1xf32>
    %16 = vector.broadcast %15 : vector<1x4x1xf32> to vector<2x4x130xf32>
    %17 = arith.mulf %12, %16 : vector<2x4x130xf32>
    %18 = vector.extract_strided_slice %9 {offsets = [0, 0, 1], sizes = [2, 4, 130], strides = [1, 1, 1]} : vector<2x4x132xf32> to vector<2x4x130xf32>
    %19 = vector.extract_strided_slice %10 {offsets = [1, 0, 0], sizes = [1, 4, 1], strides = [1, 1, 1]} : vector<3x4x1xf32> to vector<1x4x1xf32>
    %20 = vector.shape_cast %19 : vector<1x4x1xf32> to vector<4x1xf32>
    %21 = vector.shape_cast %20 : vector<4x1xf32> to vector<1x4x1xf32>
    %22 = vector.broadcast %21 : vector<1x4x1xf32> to vector<2x4x130xf32>
    %23 = arith.mulf %18, %22 : vector<2x4x130xf32>
    %24 = arith.addf %17, %23 : vector<2x4x130xf32>
    %25 = vector.extract_strided_slice %9 {offsets = [0, 0, 2], sizes = [2, 4, 130], strides = [1, 1, 1]} : vector<2x4x132xf32> to vector<2x4x130xf32>
    %26 = vector.extract_strided_slice %10 {offsets = [2, 0, 0], sizes = [1, 4, 1], strides = [1, 1, 1]} : vector<3x4x1xf32> to vector<1x4x1xf32>
    %27 = vector.shape_cast %26 : vector<1x4x1xf32> to vector<4x1xf32>
    %28 = vector.shape_cast %27 : vector<4x1xf32> to vector<1x4x1xf32>
    %29 = vector.broadcast %28 : vector<1x4x1xf32> to vector<2x4x130xf32>
    %30 = arith.mulf %25, %29 : vector<2x4x130xf32>
    %31 = arith.addf %24, %30 : vector<2x4x130xf32>
    %32 = vector.shape_cast %11 : vector<4x1xf32> to vector<1x4x1xf32>
    %33 = vector.broadcast %32 : vector<1x4x1xf32> to vector<2x4x130xf32>
    %34 = arith.addf %31, %33 : vector<2x4x130xf32>
    %c0_10 = arith.constant 0 : index
    %c0_11 = arith.constant 0 : index
    %35 = vector.load %arg4[%c0_10, %c0_11] : memref<4x1xf32, #tpu.memory_space<vmem>>, vector<4x1xf32>
    %c0_12 = arith.constant 0 : index
    %c0_13 = arith.constant 0 : index
    %36 = vector.load %arg5[%c0_12, %c0_13] : memref<4x1xf32, #tpu.memory_space<vmem>>, vector<4x1xf32>
    %37 = vector.broadcast %8 : vector<1x1x130xf32> to vector<2x4x130xf32>
    %38 = arith.mulf %34, %37 : vector<2x4x130xf32>
    %cst = arith.constant dense<0.000000e+00> : vector<2x4xf32>
    %39 = vector.multi_reduction <add>, %38, %cst [2] : vector<2x4x130xf32> to vector<2x4xf32>
    %40 = vector.shape_cast %39 : vector<2x4xf32> to vector<2x4x1xf32>
    %cst_14 = arith.constant dense<0.000000e+00> : vector<4x1xf32>
    %41 = vector.multi_reduction <add>, %40, %cst_14 [0] : vector<2x4x1xf32> to vector<4x1xf32>
    %42 = vector.shape_cast %41 : vector<4x1xf32> to vector<1x4x1xf32>
    %43 = arith.mulf %38, %38 : vector<2x4x130xf32>
    %cst_15 = arith.constant dense<0.000000e+00> : vector<2x4xf32>
    %44 = vector.multi_reduction <add>, %43, %cst_15 [2] : vector<2x4x130xf32> to vector<2x4xf32>
    %45 = vector.shape_cast %44 : vector<2x4xf32> to vector<2x4x1xf32>
    %cst_16 = arith.constant dense<0.000000e+00> : vector<4x1xf32>
    %46 = vector.multi_reduction <add>, %45, %cst_16 [0] : vector<2x4x1xf32> to vector<4x1xf32>
    %47 = vector.shape_cast %46 : vector<4x1xf32> to vector<1x4x1xf32>
    %cst_17 = arith.constant 3.906250e-03 : f32
    %48 = vector.broadcast %cst_17 : f32 to vector<1x4x1xf32>
    %49 = arith.mulf %42, %48 : vector<1x4x1xf32>
    %cst_18 = arith.constant 3.906250e-03 : f32
    %50 = vector.broadcast %cst_18 : f32 to vector<1x4x1xf32>
    %51 = arith.mulf %47, %50 : vector<1x4x1xf32>
    %52 = arith.mulf %49, %49 : vector<1x4x1xf32>
    %53 = arith.subf %51, %52 : vector<1x4x1xf32>
    %cst_19 = arith.constant 9.99999974E-6 : f32
    %54 = vector.broadcast %cst_19 : f32 to vector<1x4x1xf32>
    %55 = arith.addf %53, %54 : vector<1x4x1xf32>
    %56 = math.rsqrt %55 : vector<1x4x1xf32>
    %57 = vector.shape_cast %35 : vector<4x1xf32> to vector<1x4x1xf32>
    %58 = arith.mulf %56, %57 : vector<1x4x1xf32>
    %59 = vector.broadcast %49 : vector<1x4x1xf32> to vector<2x4x130xf32>
    %60 = arith.subf %38, %59 : vector<2x4x130xf32>
    %61 = vector.broadcast %58 : vector<1x4x1xf32> to vector<2x4x130xf32>
    %62 = arith.mulf %60, %61 : vector<2x4x130xf32>
    %63 = vector.shape_cast %36 : vector<4x1xf32> to vector<1x4x1xf32>
    %64 = vector.broadcast %63 : vector<1x4x1xf32> to vector<2x4x130xf32>
    %65 = arith.addf %62, %64 : vector<2x4x130xf32>
    %cst_20 = arith.constant 0.000000e+00 : f32
    %66 = vector.broadcast %cst_20 : f32 to vector<2x4x130xf32>
    %67 = arith.maximumf %65, %66 : vector<2x4x130xf32>
    %68 = vector.broadcast %8 : vector<1x1x130xf32> to vector<2x4x130xf32>
    %69 = arith.mulf %67, %68 : vector<2x4x130xf32>
    %c0_21 = arith.constant 0 : index
    %c0_22 = arith.constant 0 : index
    %c0_23 = arith.constant 0 : index
    %70 = vector.load %arg6[%c0_21, %c0_22, %c0_23] : memref<4x8x1xf32, #tpu.memory_space<vmem>>, vector<4x8x1xf32>
    %c0_24 = arith.constant 0 : index
    %c0_25 = arith.constant 0 : index
    %71 = vector.load %arg7[%c0_24, %c0_25] : memref<8x1xf32, #tpu.memory_space<vmem>>, vector<8x1xf32>
    %72 = vector.extract_strided_slice %69 {offsets = [0, 0, 0], sizes = [2, 1, 130], strides = [1, 1, 1]} : vector<2x4x130xf32> to vector<2x1x130xf32>
    %73 = vector.extract_strided_slice %70 {offsets = [0, 0, 0], sizes = [1, 8, 1], strides = [1, 1, 1]} : vector<4x8x1xf32> to vector<1x8x1xf32>
    %74 = vector.shape_cast %73 : vector<1x8x1xf32> to vector<8x1xf32>
    %75 = vector.shape_cast %74 : vector<8x1xf32> to vector<1x8x1xf32>
    %76 = vector.broadcast %72 : vector<2x1x130xf32> to vector<2x8x130xf32>
    %77 = vector.broadcast %75 : vector<1x8x1xf32> to vector<2x8x130xf32>
    %78 = arith.mulf %76, %77 : vector<2x8x130xf32>
    %79 = vector.extract_strided_slice %69 {offsets = [0, 1, 0], sizes = [2, 1, 130], strides = [1, 1, 1]} : vector<2x4x130xf32> to vector<2x1x130xf32>
    %80 = vector.extract_strided_slice %70 {offsets = [1, 0, 0], sizes = [1, 8, 1], strides = [1, 1, 1]} : vector<4x8x1xf32> to vector<1x8x1xf32>
    %81 = vector.shape_cast %80 : vector<1x8x1xf32> to vector<8x1xf32>
    %82 = vector.shape_cast %81 : vector<8x1xf32> to vector<1x8x1xf32>
    %83 = vector.broadcast %79 : vector<2x1x130xf32> to vector<2x8x130xf32>
    %84 = vector.broadcast %82 : vector<1x8x1xf32> to vector<2x8x130xf32>
    %85 = arith.mulf %83, %84 : vector<2x8x130xf32>
    %86 = arith.addf %78, %85 : vector<2x8x130xf32>
    %87 = vector.extract_strided_slice %69 {offsets = [0, 2, 0], sizes = [2, 1, 130], strides = [1, 1, 1]} : vector<2x4x130xf32> to vector<2x1x130xf32>
    %88 = vector.extract_strided_slice %70 {offsets = [2, 0, 0], sizes = [1, 8, 1], strides = [1, 1, 1]} : vector<4x8x1xf32> to vector<1x8x1xf32>
    %89 = vector.shape_cast %88 : vector<1x8x1xf32> to vector<8x1xf32>
    %90 = vector.shape_cast %89 : vector<8x1xf32> to vector<1x8x1xf32>
    %91 = vector.broadcast %87 : vector<2x1x130xf32> to vector<2x8x130xf32>
    %92 = vector.broadcast %90 : vector<1x8x1xf32> to vector<2x8x130xf32>
    %93 = arith.mulf %91, %92 : vector<2x8x130xf32>
    %94 = arith.addf %86, %93 : vector<2x8x130xf32>
    %95 = vector.extract_strided_slice %69 {offsets = [0, 3, 0], sizes = [2, 1, 130], strides = [1, 1, 1]} : vector<2x4x130xf32> to vector<2x1x130xf32>
    %96 = vector.extract_strided_slice %70 {offsets = [3, 0, 0], sizes = [1, 8, 1], strides = [1, 1, 1]} : vector<4x8x1xf32> to vector<1x8x1xf32>
    %97 = vector.shape_cast %96 : vector<1x8x1xf32> to vector<8x1xf32>
    %98 = vector.shape_cast %97 : vector<8x1xf32> to vector<1x8x1xf32>
    %99 = vector.broadcast %95 : vector<2x1x130xf32> to vector<2x8x130xf32>
    %100 = vector.broadcast %98 : vector<1x8x1xf32> to vector<2x8x130xf32>
    %101 = arith.mulf %99, %100 : vector<2x8x130xf32>
    %102 = arith.addf %94, %101 : vector<2x8x130xf32>
    %103 = vector.shape_cast %71 : vector<8x1xf32> to vector<1x8x1xf32>
    %104 = vector.broadcast %103 : vector<1x8x1xf32> to vector<2x8x130xf32>
    %105 = arith.addf %102, %104 : vector<2x8x130xf32>
    %c0_26 = arith.constant 0 : index
    %c0_27 = arith.constant 0 : index
    %106 = vector.load %arg8[%c0_26, %c0_27] : memref<8x1xf32, #tpu.memory_space<vmem>>, vector<8x1xf32>
    %c0_28 = arith.constant 0 : index
    %c0_29 = arith.constant 0 : index
    %107 = vector.load %arg9[%c0_28, %c0_29] : memref<8x1xf32, #tpu.memory_space<vmem>>, vector<8x1xf32>
    %108 = vector.broadcast %8 : vector<1x1x130xf32> to vector<2x8x130xf32>
    %109 = arith.mulf %105, %108 : vector<2x8x130xf32>
    %cst_30 = arith.constant dense<0.000000e+00> : vector<2x8xf32>
    %110 = vector.multi_reduction <add>, %109, %cst_30 [2] : vector<2x8x130xf32> to vector<2x8xf32>
    %111 = vector.shape_cast %110 : vector<2x8xf32> to vector<2x8x1xf32>
    %cst_31 = arith.constant dense<0.000000e+00> : vector<8x1xf32>
    %112 = vector.multi_reduction <add>, %111, %cst_31 [0] : vector<2x8x1xf32> to vector<8x1xf32>
    %113 = vector.shape_cast %112 : vector<8x1xf32> to vector<1x8x1xf32>
    %114 = arith.mulf %109, %109 : vector<2x8x130xf32>
    %cst_32 = arith.constant dense<0.000000e+00> : vector<2x8xf32>
    %115 = vector.multi_reduction <add>, %114, %cst_32 [2] : vector<2x8x130xf32> to vector<2x8xf32>
    %116 = vector.shape_cast %115 : vector<2x8xf32> to vector<2x8x1xf32>
    %cst_33 = arith.constant dense<0.000000e+00> : vector<8x1xf32>
    %117 = vector.multi_reduction <add>, %116, %cst_33 [0] : vector<2x8x1xf32> to vector<8x1xf32>
    %118 = vector.shape_cast %117 : vector<8x1xf32> to vector<1x8x1xf32>
    %cst_34 = arith.constant 3.906250e-03 : f32
    %119 = vector.broadcast %cst_34 : f32 to vector<1x8x1xf32>
    %120 = arith.mulf %113, %119 : vector<1x8x1xf32>
    %cst_35 = arith.constant 3.906250e-03 : f32
    %121 = vector.broadcast %cst_35 : f32 to vector<1x8x1xf32>
    %122 = arith.mulf %118, %121 : vector<1x8x1xf32>
    %123 = arith.mulf %120, %120 : vector<1x8x1xf32>
    %124 = arith.subf %122, %123 : vector<1x8x1xf32>
    %cst_36 = arith.constant 9.99999974E-6 : f32
    %125 = vector.broadcast %cst_36 : f32 to vector<1x8x1xf32>
    %126 = arith.addf %124, %125 : vector<1x8x1xf32>
    %127 = math.rsqrt %126 : vector<1x8x1xf32>
    %128 = vector.shape_cast %106 : vector<8x1xf32> to vector<1x8x1xf32>
    %129 = arith.mulf %127, %128 : vector<1x8x1xf32>
    %130 = vector.broadcast %120 : vector<1x8x1xf32> to vector<2x8x130xf32>
    %131 = arith.subf %109, %130 : vector<2x8x130xf32>
    %132 = vector.broadcast %129 : vector<1x8x1xf32> to vector<2x8x130xf32>
    %133 = arith.mulf %131, %132 : vector<2x8x130xf32>
    %134 = vector.shape_cast %107 : vector<8x1xf32> to vector<1x8x1xf32>
    %135 = vector.broadcast %134 : vector<1x8x1xf32> to vector<2x8x130xf32>
    %136 = arith.addf %133, %135 : vector<2x8x130xf32>
    %cst_37 = arith.constant 0.000000e+00 : f32
    %137 = vector.broadcast %cst_37 : f32 to vector<2x8x130xf32>
    %138 = arith.maximumf %136, %137 : vector<2x8x130xf32>
    %139 = vector.broadcast %8 : vector<1x1x130xf32> to vector<2x8x130xf32>
    %140 = arith.mulf %138, %139 : vector<2x8x130xf32>
    %c0_38 = arith.constant 0 : index
    %c0_39 = arith.constant 0 : index
    %c0_40 = arith.constant 0 : index
    %141 = vector.load %arg10[%c0_38, %c0_39, %c0_40] : memref<3x8x1xf32, #tpu.memory_space<vmem>>, vector<3x8x1xf32>
    %c0_41 = arith.constant 0 : index
    %c0_42 = arith.constant 0 : index
    %142 = vector.load %arg11[%c0_41, %c0_42] : memref<8x1xf32, #tpu.memory_space<vmem>>, vector<8x1xf32>
    %143 = vector.extract_strided_slice %140 {offsets = [0, 0, 0], sizes = [2, 8, 128], strides = [1, 1, 1]} : vector<2x8x130xf32> to vector<2x8x128xf32>
    %144 = vector.extract_strided_slice %141 {offsets = [0, 0, 0], sizes = [1, 8, 1], strides = [1, 1, 1]} : vector<3x8x1xf32> to vector<1x8x1xf32>
    %145 = vector.shape_cast %144 : vector<1x8x1xf32> to vector<8x1xf32>
    %146 = vector.shape_cast %145 : vector<8x1xf32> to vector<1x8x1xf32>
    %147 = vector.broadcast %146 : vector<1x8x1xf32> to vector<2x8x128xf32>
    %148 = arith.mulf %143, %147 : vector<2x8x128xf32>
    %149 = vector.extract_strided_slice %140 {offsets = [0, 0, 1], sizes = [2, 8, 128], strides = [1, 1, 1]} : vector<2x8x130xf32> to vector<2x8x128xf32>
    %150 = vector.extract_strided_slice %141 {offsets = [1, 0, 0], sizes = [1, 8, 1], strides = [1, 1, 1]} : vector<3x8x1xf32> to vector<1x8x1xf32>
    %151 = vector.shape_cast %150 : vector<1x8x1xf32> to vector<8x1xf32>
    %152 = vector.shape_cast %151 : vector<8x1xf32> to vector<1x8x1xf32>
    %153 = vector.broadcast %152 : vector<1x8x1xf32> to vector<2x8x128xf32>
    %154 = arith.mulf %149, %153 : vector<2x8x128xf32>
    %155 = arith.addf %148, %154 : vector<2x8x128xf32>
    %156 = vector.extract_strided_slice %140 {offsets = [0, 0, 2], sizes = [2, 8, 128], strides = [1, 1, 1]} : vector<2x8x130xf32> to vector<2x8x128xf32>
    %157 = vector.extract_strided_slice %141 {offsets = [2, 0, 0], sizes = [1, 8, 1], strides = [1, 1, 1]} : vector<3x8x1xf32> to vector<1x8x1xf32>
    %158 = vector.shape_cast %157 : vector<1x8x1xf32> to vector<8x1xf32>
    %159 = vector.shape_cast %158 : vector<8x1xf32> to vector<1x8x1xf32>
    %160 = vector.broadcast %159 : vector<1x8x1xf32> to vector<2x8x128xf32>
    %161 = arith.mulf %156, %160 : vector<2x8x128xf32>
    %162 = arith.addf %155, %161 : vector<2x8x128xf32>
    %163 = vector.shape_cast %142 : vector<8x1xf32> to vector<1x8x1xf32>
    %164 = vector.broadcast %163 : vector<1x8x1xf32> to vector<2x8x128xf32>
    %165 = arith.addf %162, %164 : vector<2x8x128xf32>
    %c0_43 = arith.constant 0 : index
    %c0_44 = arith.constant 0 : index
    %166 = vector.load %arg12[%c0_43, %c0_44] : memref<8x1xf32, #tpu.memory_space<vmem>>, vector<8x1xf32>
    %c0_45 = arith.constant 0 : index
    %c0_46 = arith.constant 0 : index
    %167 = vector.load %arg13[%c0_45, %c0_46] : memref<8x1xf32, #tpu.memory_space<vmem>>, vector<8x1xf32>
    %cst_47 = arith.constant dense<0.000000e+00> : vector<2x8xf32>
    %168 = vector.multi_reduction <add>, %165, %cst_47 [2] : vector<2x8x128xf32> to vector<2x8xf32>
    %169 = vector.shape_cast %168 : vector<2x8xf32> to vector<2x8x1xf32>
    %cst_48 = arith.constant dense<0.000000e+00> : vector<8x1xf32>
    %170 = vector.multi_reduction <add>, %169, %cst_48 [0] : vector<2x8x1xf32> to vector<8x1xf32>
    %171 = vector.shape_cast %170 : vector<8x1xf32> to vector<1x8x1xf32>
    %172 = arith.mulf %165, %165 : vector<2x8x128xf32>
    %cst_49 = arith.constant dense<0.000000e+00> : vector<2x8xf32>
    %173 = vector.multi_reduction <add>, %172, %cst_49 [2] : vector<2x8x128xf32> to vector<2x8xf32>
    %174 = vector.shape_cast %173 : vector<2x8xf32> to vector<2x8x1xf32>
    %cst_50 = arith.constant dense<0.000000e+00> : vector<8x1xf32>
    %175 = vector.multi_reduction <add>, %174, %cst_50 [0] : vector<2x8x1xf32> to vector<8x1xf32>
    %176 = vector.shape_cast %175 : vector<8x1xf32> to vector<1x8x1xf32>
    %cst_51 = arith.constant 3.906250e-03 : f32
    %177 = vector.broadcast %cst_51 : f32 to vector<1x8x1xf32>
    %178 = arith.mulf %171, %177 : vector<1x8x1xf32>
    %cst_52 = arith.constant 3.906250e-03 : f32
    %179 = vector.broadcast %cst_52 : f32 to vector<1x8x1xf32>
    %180 = arith.mulf %176, %179 : vector<1x8x1xf32>
    %181 = arith.mulf %178, %178 : vector<1x8x1xf32>
    %182 = arith.subf %180, %181 : vector<1x8x1xf32>
    %cst_53 = arith.constant 9.99999974E-6 : f32
    %183 = vector.broadcast %cst_53 : f32 to vector<1x8x1xf32>
    %184 = arith.addf %182, %183 : vector<1x8x1xf32>
    %185 = math.rsqrt %184 : vector<1x8x1xf32>
    %186 = vector.shape_cast %166 : vector<8x1xf32> to vector<1x8x1xf32>
    %187 = arith.mulf %185, %186 : vector<1x8x1xf32>
    %188 = vector.broadcast %178 : vector<1x8x1xf32> to vector<2x8x128xf32>
    %189 = arith.subf %165, %188 : vector<2x8x128xf32>
    %190 = vector.broadcast %187 : vector<1x8x1xf32> to vector<2x8x128xf32>
    %191 = arith.mulf %189, %190 : vector<2x8x128xf32>
    %192 = vector.shape_cast %167 : vector<8x1xf32> to vector<1x8x1xf32>
    %193 = vector.broadcast %192 : vector<1x8x1xf32> to vector<2x8x128xf32>
    %194 = arith.addf %191, %193 : vector<2x8x128xf32>
    %cst_54 = arith.constant 0.000000e+00 : f32
    %195 = vector.broadcast %cst_54 : f32 to vector<2x8x128xf32>
    %196 = arith.maximumf %194, %195 : vector<2x8x128xf32>
    %c0_55 = arith.constant 0 : index
    %c0_56 = arith.constant 0 : index
    %c0_57 = arith.constant 0 : index
    %197 = vector.load %arg14[%c0_55, %c0_56, %c0_57] : memref<8x4x1xf32, #tpu.memory_space<vmem>>, vector<8x4x1xf32>
    %c0_58 = arith.constant 0 : index
    %c0_59 = arith.constant 0 : index
    %198 = vector.load %arg15[%c0_58, %c0_59] : memref<4x1xf32, #tpu.memory_space<vmem>>, vector<4x1xf32>
    %199 = vector.extract_strided_slice %196 {offsets = [0, 0, 0], sizes = [2, 1, 128], strides = [1, 1, 1]} : vector<2x8x128xf32> to vector<2x1x128xf32>
    %200 = vector.extract_strided_slice %197 {offsets = [0, 0, 0], sizes = [1, 4, 1], strides = [1, 1, 1]} : vector<8x4x1xf32> to vector<1x4x1xf32>
    %201 = vector.shape_cast %200 : vector<1x4x1xf32> to vector<4x1xf32>
    %202 = vector.shape_cast %201 : vector<4x1xf32> to vector<1x4x1xf32>
    %203 = vector.broadcast %199 : vector<2x1x128xf32> to vector<2x4x128xf32>
    %204 = vector.broadcast %202 : vector<1x4x1xf32> to vector<2x4x128xf32>
    %205 = arith.mulf %203, %204 : vector<2x4x128xf32>
    %206 = vector.extract_strided_slice %196 {offsets = [0, 1, 0], sizes = [2, 1, 128], strides = [1, 1, 1]} : vector<2x8x128xf32> to vector<2x1x128xf32>
    %207 = vector.extract_strided_slice %197 {offsets = [1, 0, 0], sizes = [1, 4, 1], strides = [1, 1, 1]} : vector<8x4x1xf32> to vector<1x4x1xf32>
    %208 = vector.shape_cast %207 : vector<1x4x1xf32> to vector<4x1xf32>
    %209 = vector.shape_cast %208 : vector<4x1xf32> to vector<1x4x1xf32>
    %210 = vector.broadcast %206 : vector<2x1x128xf32> to vector<2x4x128xf32>
    %211 = vector.broadcast %209 : vector<1x4x1xf32> to vector<2x4x128xf32>
    %212 = arith.mulf %210, %211 : vector<2x4x128xf32>
    %213 = arith.addf %205, %212 : vector<2x4x128xf32>
    %214 = vector.extract_strided_slice %196 {offsets = [0, 2, 0], sizes = [2, 1, 128], strides = [1, 1, 1]} : vector<2x8x128xf32> to vector<2x1x128xf32>
    %215 = vector.extract_strided_slice %197 {offsets = [2, 0, 0], sizes = [1, 4, 1], strides = [1, 1, 1]} : vector<8x4x1xf32> to vector<1x4x1xf32>
    %216 = vector.shape_cast %215 : vector<1x4x1xf32> to vector<4x1xf32>
    %217 = vector.shape_cast %216 : vector<4x1xf32> to vector<1x4x1xf32>
    %218 = vector.broadcast %214 : vector<2x1x128xf32> to vector<2x4x128xf32>
    %219 = vector.broadcast %217 : vector<1x4x1xf32> to vector<2x4x128xf32>
    %220 = arith.mulf %218, %219 : vector<2x4x128xf32>
    %221 = arith.addf %213, %220 : vector<2x4x128xf32>
    %222 = vector.extract_strided_slice %196 {offsets = [0, 3, 0], sizes = [2, 1, 128], strides = [1, 1, 1]} : vector<2x8x128xf32> to vector<2x1x128xf32>
    %223 = vector.extract_strided_slice %197 {offsets = [3, 0, 0], sizes = [1, 4, 1], strides = [1, 1, 1]} : vector<8x4x1xf32> to vector<1x4x1xf32>
    %224 = vector.shape_cast %223 : vector<1x4x1xf32> to vector<4x1xf32>
    %225 = vector.shape_cast %224 : vector<4x1xf32> to vector<1x4x1xf32>
    %226 = vector.broadcast %222 : vector<2x1x128xf32> to vector<2x4x128xf32>
    %227 = vector.broadcast %225 : vector<1x4x1xf32> to vector<2x4x128xf32>
    %228 = arith.mulf %226, %227 : vector<2x4x128xf32>
    %229 = arith.addf %221, %228 : vector<2x4x128xf32>
    %230 = vector.extract_strided_slice %196 {offsets = [0, 4, 0], sizes = [2, 1, 128], strides = [1, 1, 1]} : vector<2x8x128xf32> to vector<2x1x128xf32>
    %231 = vector.extract_strided_slice %197 {offsets = [4, 0, 0], sizes = [1, 4, 1], strides = [1, 1, 1]} : vector<8x4x1xf32> to vector<1x4x1xf32>
    %232 = vector.shape_cast %231 : vector<1x4x1xf32> to vector<4x1xf32>
    %233 = vector.shape_cast %232 : vector<4x1xf32> to vector<1x4x1xf32>
    %234 = vector.broadcast %230 : vector<2x1x128xf32> to vector<2x4x128xf32>
    %235 = vector.broadcast %233 : vector<1x4x1xf32> to vector<2x4x128xf32>
    %236 = arith.mulf %234, %235 : vector<2x4x128xf32>
    %237 = arith.addf %229, %236 : vector<2x4x128xf32>
    %238 = vector.extract_strided_slice %196 {offsets = [0, 5, 0], sizes = [2, 1, 128], strides = [1, 1, 1]} : vector<2x8x128xf32> to vector<2x1x128xf32>
    %239 = vector.extract_strided_slice %197 {offsets = [5, 0, 0], sizes = [1, 4, 1], strides = [1, 1, 1]} : vector<8x4x1xf32> to vector<1x4x1xf32>
    %240 = vector.shape_cast %239 : vector<1x4x1xf32> to vector<4x1xf32>
    %241 = vector.shape_cast %240 : vector<4x1xf32> to vector<1x4x1xf32>
    %242 = vector.broadcast %238 : vector<2x1x128xf32> to vector<2x4x128xf32>
    %243 = vector.broadcast %241 : vector<1x4x1xf32> to vector<2x4x128xf32>
    %244 = arith.mulf %242, %243 : vector<2x4x128xf32>
    %245 = arith.addf %237, %244 : vector<2x4x128xf32>
    %246 = vector.extract_strided_slice %196 {offsets = [0, 6, 0], sizes = [2, 1, 128], strides = [1, 1, 1]} : vector<2x8x128xf32> to vector<2x1x128xf32>
    %247 = vector.extract_strided_slice %197 {offsets = [6, 0, 0], sizes = [1, 4, 1], strides = [1, 1, 1]} : vector<8x4x1xf32> to vector<1x4x1xf32>
    %248 = vector.shape_cast %247 : vector<1x4x1xf32> to vector<4x1xf32>
    %249 = vector.shape_cast %248 : vector<4x1xf32> to vector<1x4x1xf32>
    %250 = vector.broadcast %246 : vector<2x1x128xf32> to vector<2x4x128xf32>
    %251 = vector.broadcast %249 : vector<1x4x1xf32> to vector<2x4x128xf32>
    %252 = arith.mulf %250, %251 : vector<2x4x128xf32>
    %253 = arith.addf %245, %252 : vector<2x4x128xf32>
    %254 = vector.extract_strided_slice %196 {offsets = [0, 7, 0], sizes = [2, 1, 128], strides = [1, 1, 1]} : vector<2x8x128xf32> to vector<2x1x128xf32>
    %255 = vector.extract_strided_slice %197 {offsets = [7, 0, 0], sizes = [1, 4, 1], strides = [1, 1, 1]} : vector<8x4x1xf32> to vector<1x4x1xf32>
    %256 = vector.shape_cast %255 : vector<1x4x1xf32> to vector<4x1xf32>
    %257 = vector.shape_cast %256 : vector<4x1xf32> to vector<1x4x1xf32>
    %258 = vector.broadcast %254 : vector<2x1x128xf32> to vector<2x4x128xf32>
    %259 = vector.broadcast %257 : vector<1x4x1xf32> to vector<2x4x128xf32>
    %260 = arith.mulf %258, %259 : vector<2x4x128xf32>
    %261 = arith.addf %253, %260 : vector<2x4x128xf32>
    %262 = vector.shape_cast %198 : vector<4x1xf32> to vector<1x4x1xf32>
    %263 = vector.broadcast %262 : vector<1x4x1xf32> to vector<2x4x128xf32>
    %264 = arith.addf %261, %263 : vector<2x4x128xf32>
    %c0_60 = arith.constant 0 : index
    %c0_61 = arith.constant 0 : index
    %265 = vector.load %arg16[%c0_60, %c0_61] : memref<4x1xf32, #tpu.memory_space<vmem>>, vector<4x1xf32>
    %c0_62 = arith.constant 0 : index
    %c0_63 = arith.constant 0 : index
    %266 = vector.load %arg17[%c0_62, %c0_63] : memref<4x1xf32, #tpu.memory_space<vmem>>, vector<4x1xf32>
    %cst_64 = arith.constant dense<0.000000e+00> : vector<2x4xf32>
    %267 = vector.multi_reduction <add>, %264, %cst_64 [2] : vector<2x4x128xf32> to vector<2x4xf32>
    %268 = vector.shape_cast %267 : vector<2x4xf32> to vector<2x4x1xf32>
    %cst_65 = arith.constant dense<0.000000e+00> : vector<4x1xf32>
    %269 = vector.multi_reduction <add>, %268, %cst_65 [0] : vector<2x4x1xf32> to vector<4x1xf32>
    %270 = vector.shape_cast %269 : vector<4x1xf32> to vector<1x4x1xf32>
    %271 = arith.mulf %264, %264 : vector<2x4x128xf32>
    %cst_66 = arith.constant dense<0.000000e+00> : vector<2x4xf32>
    %272 = vector.multi_reduction <add>, %271, %cst_66 [2] : vector<2x4x128xf32> to vector<2x4xf32>
    %273 = vector.shape_cast %272 : vector<2x4xf32> to vector<2x4x1xf32>
    %cst_67 = arith.constant dense<0.000000e+00> : vector<4x1xf32>
    %274 = vector.multi_reduction <add>, %273, %cst_67 [0] : vector<2x4x1xf32> to vector<4x1xf32>
    %275 = vector.shape_cast %274 : vector<4x1xf32> to vector<1x4x1xf32>
    %cst_68 = arith.constant 3.906250e-03 : f32
    %276 = vector.broadcast %cst_68 : f32 to vector<1x4x1xf32>
    %277 = arith.mulf %270, %276 : vector<1x4x1xf32>
    %cst_69 = arith.constant 3.906250e-03 : f32
    %278 = vector.broadcast %cst_69 : f32 to vector<1x4x1xf32>
    %279 = arith.mulf %275, %278 : vector<1x4x1xf32>
    %280 = arith.mulf %277, %277 : vector<1x4x1xf32>
    %281 = arith.subf %279, %280 : vector<1x4x1xf32>
    %cst_70 = arith.constant 9.99999974E-6 : f32
    %282 = vector.broadcast %cst_70 : f32 to vector<1x4x1xf32>
    %283 = arith.addf %281, %282 : vector<1x4x1xf32>
    %284 = math.rsqrt %283 : vector<1x4x1xf32>
    %285 = vector.shape_cast %265 : vector<4x1xf32> to vector<1x4x1xf32>
    %286 = arith.mulf %284, %285 : vector<1x4x1xf32>
    %287 = vector.broadcast %277 : vector<1x4x1xf32> to vector<2x4x128xf32>
    %288 = arith.subf %264, %287 : vector<2x4x128xf32>
    %289 = vector.broadcast %286 : vector<1x4x1xf32> to vector<2x4x128xf32>
    %290 = arith.mulf %288, %289 : vector<2x4x128xf32>
    %291 = vector.shape_cast %266 : vector<4x1xf32> to vector<1x4x1xf32>
    %292 = vector.broadcast %291 : vector<1x4x1xf32> to vector<2x4x128xf32>
    %293 = arith.addf %290, %292 : vector<2x4x128xf32>
    %cst_71 = arith.constant 0.000000e+00 : f32
    %294 = vector.broadcast %cst_71 : f32 to vector<2x4x128xf32>
    %295 = arith.maximumf %293, %294 : vector<2x4x128xf32>
    %c0_72 = arith.constant 0 : index
    %c0_73 = arith.constant 0 : index
    %c0_74 = arith.constant 0 : index
    %296 = vector.load %arg18[%c0_72, %c0_73, %c0_74] : memref<4x4x1xf32, #tpu.memory_space<vmem>>, vector<4x4x1xf32>
    %c0_75 = arith.constant 0 : index
    %c0_76 = arith.constant 0 : index
    %297 = vector.load %arg19[%c0_75, %c0_76] : memref<4x1xf32, #tpu.memory_space<vmem>>, vector<4x1xf32>
    %298 = vector.extract_strided_slice %0 {offsets = [0, 0, 0], sizes = [2, 1, 128], strides = [1, 1, 1]} : vector<2x4x128xf32> to vector<2x1x128xf32>
    %299 = vector.extract_strided_slice %296 {offsets = [0, 0, 0], sizes = [1, 4, 1], strides = [1, 1, 1]} : vector<4x4x1xf32> to vector<1x4x1xf32>
    %300 = vector.shape_cast %299 : vector<1x4x1xf32> to vector<4x1xf32>
    %301 = vector.shape_cast %300 : vector<4x1xf32> to vector<1x4x1xf32>
    %302 = vector.broadcast %298 : vector<2x1x128xf32> to vector<2x4x128xf32>
    %303 = vector.broadcast %301 : vector<1x4x1xf32> to vector<2x4x128xf32>
    %304 = arith.mulf %302, %303 : vector<2x4x128xf32>
    %305 = vector.extract_strided_slice %0 {offsets = [0, 1, 0], sizes = [2, 1, 128], strides = [1, 1, 1]} : vector<2x4x128xf32> to vector<2x1x128xf32>
    %306 = vector.extract_strided_slice %296 {offsets = [1, 0, 0], sizes = [1, 4, 1], strides = [1, 1, 1]} : vector<4x4x1xf32> to vector<1x4x1xf32>
    %307 = vector.shape_cast %306 : vector<1x4x1xf32> to vector<4x1xf32>
    %308 = vector.shape_cast %307 : vector<4x1xf32> to vector<1x4x1xf32>
    %309 = vector.broadcast %305 : vector<2x1x128xf32> to vector<2x4x128xf32>
    %310 = vector.broadcast %308 : vector<1x4x1xf32> to vector<2x4x128xf32>
    %311 = arith.mulf %309, %310 : vector<2x4x128xf32>
    %312 = arith.addf %304, %311 : vector<2x4x128xf32>
    %313 = vector.extract_strided_slice %0 {offsets = [0, 2, 0], sizes = [2, 1, 128], strides = [1, 1, 1]} : vector<2x4x128xf32> to vector<2x1x128xf32>
    %314 = vector.extract_strided_slice %296 {offsets = [2, 0, 0], sizes = [1, 4, 1], strides = [1, 1, 1]} : vector<4x4x1xf32> to vector<1x4x1xf32>
    %315 = vector.shape_cast %314 : vector<1x4x1xf32> to vector<4x1xf32>
    %316 = vector.shape_cast %315 : vector<4x1xf32> to vector<1x4x1xf32>
    %317 = vector.broadcast %313 : vector<2x1x128xf32> to vector<2x4x128xf32>
    %318 = vector.broadcast %316 : vector<1x4x1xf32> to vector<2x4x128xf32>
    %319 = arith.mulf %317, %318 : vector<2x4x128xf32>
    %320 = arith.addf %312, %319 : vector<2x4x128xf32>
    %321 = vector.extract_strided_slice %0 {offsets = [0, 3, 0], sizes = [2, 1, 128], strides = [1, 1, 1]} : vector<2x4x128xf32> to vector<2x1x128xf32>
    %322 = vector.extract_strided_slice %296 {offsets = [3, 0, 0], sizes = [1, 4, 1], strides = [1, 1, 1]} : vector<4x4x1xf32> to vector<1x4x1xf32>
    %323 = vector.shape_cast %322 : vector<1x4x1xf32> to vector<4x1xf32>
    %324 = vector.shape_cast %323 : vector<4x1xf32> to vector<1x4x1xf32>
    %325 = vector.broadcast %321 : vector<2x1x128xf32> to vector<2x4x128xf32>
    %326 = vector.broadcast %324 : vector<1x4x1xf32> to vector<2x4x128xf32>
    %327 = arith.mulf %325, %326 : vector<2x4x128xf32>
    %328 = arith.addf %320, %327 : vector<2x4x128xf32>
    %329 = vector.shape_cast %297 : vector<4x1xf32> to vector<1x4x1xf32>
    %330 = vector.broadcast %329 : vector<1x4x1xf32> to vector<2x4x128xf32>
    %331 = arith.addf %328, %330 : vector<2x4x128xf32>
    %332 = arith.addf %295, %331 : vector<2x4x128xf32>
    %c0_77 = arith.constant 0 : index
    %c0_78 = arith.constant 0 : index
    %c0_79 = arith.constant 0 : index
    %333 = vector.load %arg20[%c0_77, %c0_78, %c0_79] : memref<2x4x128xf32, #tpu.memory_space<vmem>>, vector<2x4x128xf32>
    tpu.vector_store %arg20[%c0_77, %c0_78, %c0_79], %332 {strides = array<i32>} : memref<2x4x128xf32, #tpu.memory_space<vmem>>, vector<2x4x128xf32>,
    return
  }
}

</mosaic_0001>

<bundles_post_ra>
// kernel: tpu_custom_call.1
= control target key start
LH: loop header
LB: loop body
LE: loop exit
PB: predicated region body
PF: predicated region fallthrough
CT: control target
= control target key end

     0   :  { %s1195_s0 = inlined_call_operand.vmem [shape: f32[2,4,128], index: 0, kind: input, shape index: {}]   ;;  %s1196_s1 = inlined_call_operand.vmem [shape: f32[2,4,132], index: 1, kind: input, shape index: {}]   ;;  %s1197_s2 = inlined_call_operand.vmem [shape: f32[3,4,1], index: 2, kind: input, shape index: {}]   ;;  %s1198_s3 = inlined_call_operand.vmem [shape: f32[4,1], index: 3, kind: input, shape index: {}]   ;;  %s1199_s4 = inlined_call_operand.vmem [shape: f32[4,1], index: 4, kind: input, shape index: {}]   ;;  %s1200_s5 = inlined_call_operand.vmem [shape: f32[4,1], index: 5, kind: input, shape index: {}]   ;;  %s1201_s6 = inlined_call_operand.vmem [shape: f32[4,8,1], index: 6, kind: input, shape index: {}]   ;;  %s1202_s7 = inlined_call_operand.vmem [shape: f32[8,1], index: 7, kind: input, shape index: {}]   ;;  %s1203_s8 = inlined_call_operand.vmem [shape: f32[8,1], index: 8, kind: input, shape index: {}]   ;;  %s1204_s9 = inlined_call_operand.vmem [shape: f32[8,1], index: 9, kind: input, shape index: {}]   ;;  %s1205_s10 = inlined_call_operand.vmem [shape: f32[3,8,1], index: 10, kind: input, shape index: {}]   ;;  %s1206_s11 = inlined_call_operand.vmem [shape: f32[8,1], index: 11, kind: input, shape index: {}]   ;;  %s1207_s12 = inlined_call_operand.vmem [shape: f32[8,1], index: 12, kind: input, shape index: {}]   ;;  %s1208_s13 = inlined_call_operand.vmem [shape: f32[8,1], index: 13, kind: input, shape index: {}]   ;;  %s1209_s14 = inlined_call_operand.vmem [shape: f32[8,4,1], index: 14, kind: input, shape index: {}]   ;;  %s1210_s15 = inlined_call_operand.vmem [shape: f32[4,1], index: 15, kind: input, shape index: {}]   ;;  %s1211_s16 = inlined_call_operand.vmem [shape: f32[4,1], index: 16, kind: input, shape index: {}]   ;;  %s1212_s17 = inlined_call_operand.vmem [shape: f32[4,1], index: 17, kind: input, shape index: {}]   ;;  %s1213_s18 = inlined_call_operand.vmem [shape: f32[4,4,1], index: 18, kind: input, shape index: {}]   ;;  %s1214_s19 = inlined_call_operand.vmem [shape: f32[4,1], index: 19, kind: input, shape index: {}]   ;;  %s1215_s20 = inlined_call_operand.hbm [shape: f32[2,4,128], index: 20, kind: output, shape index: {}]  }
   0x1   :  { %1219 = sst [smem:[#allocation5_spill]] %s1195_s0 }
   0x2   :  { %1220 = sst [smem:[#allocation6_spill]] %s1196_s1 }
   0x3   :  { %1221 = sst [smem:[#allocation7_spill]] %s1197_s2 }
   0x4   :  { %1222 = sst [smem:[#allocation8_spill]] %s1198_s3 }
   0x5   :  { %1223 = sst [smem:[#allocation9_spill]] %s1199_s4 }
   0x6   :  { %s1224_s23 = sld [smem:[#allocation7_spill]]  ;;  %v864_v1 = vmov 0  }
   0x7   :  { %827 = vset.pattern.permute.xlu0 %v864_v1  ;;  %828 = vset.pattern.permute.xlu1 %v864_v1 }
   0xc   :  { %v84_v0 = vld [vmem:[%s1224_s23 + $0x4] sm:$0xf]  ;;  %v83_v2 = vld [vmem:[%s1224_s23] sm:$0xf] }
   0xd   :  { %100 = vperm.xlu0 %827, %v84_v0   ;;  %89 = vperm.xlu1 %828, %v83_v2  }
   0xe   :  { %25 = vsyncpa [#allocation3], 0  ;;  %829 = vset.pattern.permute.xlu2 %v864_v1  ;;  %v85_v3 = vld [vmem:[%s1224_s23 + $0x8] sm:$0xf]  ;;  %v865_v4 = vmov 839922192   ;;  %v68_v18 = vlaneseq }
   0xf   :  { %v92_v5 = vunpack.c.l.s4 %v865_v4  ;;  %s1225_s28 = sld [smem:[#allocation6_spill]]  ;;  %s866_s30 = smov 127   ;;  %vm117_vm1 = vcmask 1039360   ;;  %v868_v30 = vmov 0.0   ;;  %vm143_vm3 = vcmask 1031168  }
  0x10   :  { %s1226_s1 = sld [smem:[#allocation8_spill]]  ;;  %s867_s22 = smov 126   ;;  %v69_v21 = vand.u32 127, %v68_v18  ;;  %vm166_vm4 = vcmask 1043456   ;;  %vm185_vm5 = vcmask 11264   ;;  %vm394_vm9 = vcmask 15360  }
  0x11   :  { %v986_v6 = vunpack.c.0.s8 %v92_v5  ;;  %s1227_s0 = sld [smem:[#allocation9_spill]]  ;;  %s805_s2 = sshll.u32 %s1215_s20, 4  ;;  %s806_s2 = int_to_ptr.hbm [resolvable:$true] %s805_s2 }
  0x12   :  { %v70_v22 = vadd.s32 128, %v69_v21  ;;  %vm71_vm2 = vcmp.ge.s32.totalorder %v69_v21, 1  ;;  %s870_s25 = smov 64   ;;  %s871_s3 = smov 4  }
  0x13   :  { %v1009_v38 = vsel %vm71_vm2, 1.0, %v868_v30 }
  0x14   :  { %vm74_vm0 = vcmp.lt.s32.totalorder %v70_v22, 129 }
  0x15   :  { %126 = vperm.xlu0 %827, %v85_v3   ;;  %v81_v8 = vld [vmem:[%s1225_s28] sm:$0xff]  ;;  %v82_v9 = vld [vmem:[%s1225_s28 + $0x8] sm:$0xff]  ;;  %v1005_v31 = vsel %vm74_vm0, 1.0, %v868_v30 }
  0x16   :  { %v86_v17 = vld [vmem:[%s1226_s1] sm:$0xf]  ;;  %v165_v36 = vrot.slane %v1005_v31, 4 }
  0x18   :  { %v1016_v46 = vsel %vm166_vm4, %v1009_v38, %v165_v36 }
  0x7f   :  { %v101_v7 = vpop.permute.xlu0 %100  ;;  %v90_v19 = vpop.permute.xlu1 %89 }
  0x80   :  { %v105_v10 = vperm.slane %v101_v7, %v986_v6  ;;  %v94_v25 = vperm.slane %v90_v19, %v986_v6 }
  0x82   :  { %v107_v11 = vmul.f32 %v105_v10, %v81_v8  ;;  %v108_v12 = vmul.f32 %v105_v10, %v82_v9  ;;  %v96_v29 = vmul.f32 %v94_v25, %v81_v8  ;;  %v97_v33 = vmul.f32 %v94_v25, %v82_v9 }
  0x84   :  { %113 = vrot.lane.b32.xlu2 %v108_v12, %s866_s30  ;;  %111 = vrot.lane.b32.xlu1 %v107_v11, %s866_s30  ;;  %v162_v11 = vld [vmem:[%s1200_s5] sm:$0xf]  ;;  %v277_v12 = vld [vmem:[%s1201_s6 + $0x8] sm:$0xff] }
  0x87   :  { %v127_v13 = vpop.permute.xlu0 %126 }
  0x88   :  { %v131_v14 = vperm.slane %v127_v13, %v986_v6  ;;  %v276_v13 = vld [vmem:[%s1201_s6] sm:$0xff] }
  0x8a   :  { %v133_v15 = vmul.f32 %v131_v14, %v81_v8  ;;  %v134_v16 = vmul.f32 %v131_v14, %v82_v9  ;;  %v280_v14 = vld [vmem:[%s1202_s7] sm:$0xff] }
  0x8c   :  { %139 = vrot.lane.b32.xlu0 %v134_v16, %s867_s22  ;;  %137 = vrot.lane.b32.xlu2 %v133_v15, %s867_s22  ;;  %v279_v15 = vld [vmem:[%s1201_s6 + $0x18] sm:$0xff] }
  0x8d   :  { %152 = vperm.xlu1 %828, %v86_v17  }
  0xde   :  { %v114_v20 = vpop.permute.xlu2 %113 }
  0xdf   :  { %v116_v27 = vrot.slane %v114_v20, 4 }
  0xe1   :  { %v119_v35 = vsel %vm117_vm1, %v114_v20, %v116_v27 }
  0xe2   :  { %v123_v42 = vadd.f32 %v119_v35, %v97_v33 }
  0xe6   :  { %v138_v26 = vpop.permute.xlu2 %137 }
  0xe7   :  { %v141_v32 = vrot.slane %v138_v26, 4 }
  0xe9   :  { %v144_v39 = vsel %vm143_vm3, %v138_v26, %v141_v32 }
  0xf6   :  { %v112_v23 = vpop.permute.xlu1 %111 }
  0xf7   :  { %v115_v24 = vrot.slane %v112_v23, 4 }
  0xf9   :  { %v118_v28 = vsel %vm117_vm1, %v112_v23, %v115_v24 }
  0xfa   :  { %v122_v34 = vadd.f32 %v118_v28, %v96_v29 }
  0xfc   :  { %v148_v43 = vadd.f32 %v144_v39, %v122_v34 }
  0xfe   :  { %v140_v37 = vpop.permute.xlu0 %139 }
  0xff   :  { %v142_v40 = vrot.slane %v140_v37, 4  ;;  %v153_v41 = vpop.permute.xlu1 %152 }
 0x100   :  { %v157_v44 = vperm.slane %v153_v41, %v986_v6 }
 0x101   :  { %v145_v45 = vsel %vm143_vm3, %v140_v37, %v142_v40  ;;  %v161_v37 = vld [vmem:[%s1227_s0] sm:$0xf] }
 0x102   :  { %v149_v47 = vadd.f32 %v145_v45, %v123_v42  ;;  %v159_v48 = vadd.f32 %v157_v44, %v148_v43  ;;  %v278_v42 = vld [vmem:[%s1201_s6 + $0x10] sm:$0xff] }
 0x104   :  { %v160_v49 = vadd.f32 %v157_v44, %v149_v47  ;;  %v1019_v50 = vmul.f32 %v1016_v46, %v159_v48 }
 0x106   :  { %v1022_v51 = vmul.f32 %v1016_v46, %v160_v49  ;;  %173 = vst [vmem:[#allocation1] ss:$2 sm:$0xff] %v1019_v50  ;;  %v198_v52 = vmul.f32 %v1019_v50, %v1019_v50 }
 0x108   :  { %177 = vst [vmem:[#allocation1 + $0x10] ss:$2 sm:$0xff] %v1022_v51  ;;  %v199_v55 = vmul.f32 %v1022_v51, %v1022_v51 }
 0x10d   :  { %v174_v53 = vld.sshfl [vmem:[#allocation1] sm:$0xff pattern:$0x75316420]  ;;  %v175_v54 = vld.sshfl [vmem:[#allocation1 + $0x8] sm:$0xff pattern:$0x75316420] }
 0x10e   :  { %v184_v56 = vsel %vm166_vm4, %v174_v53, 0.0  ;;  %v186_v57 = vsel %vm185_vm5, %v175_v54, 0.0  ;;  %202 = vst [vmem:[#allocation1] ss:$2 sm:$0xff] %v198_v52 }
 0x10f   :  { %v187_v58 = vadd.f32 %v186_v57, %v184_v56  ;;  %v178_v59 = vld.sshfl [vmem:[#allocation1 + $0x10] sm:$0xff pattern:$0x75316420]  ;;  %v179_v60 = vld.sshfl [vmem:[#allocation1 + $0x18] sm:$0xff pattern:$0x75316420] }
 0x110   :  { %v190_v61 = vsel %vm166_vm4, %v178_v59, 0.0  ;;  %v191_v62 = vsel %vm185_vm5, %v179_v60, 0.0  ;;  %206 = vst [vmem:[#allocation1 + $0x10] ss:$2 sm:$0xff] %v199_v55 }
 0x111   :  { %188 = vadd.xlane.f32.xlu2 %v187_v58  ;;  %v192_v63 = vadd.f32 %v191_v62, %v190_v61 }
 0x113   :  { %193 = vadd.xlane.f32.xlu0 %v192_v63 }
 0x115   :  { %v203_v0 = vld.sshfl [vmem:[#allocation1] sm:$0xff pattern:$0x75316420]  ;;  %v204_v1 = vld.sshfl [vmem:[#allocation1 + $0x8] sm:$0xff pattern:$0x75316420] }
 0x116   :  { %v213_v2 = vsel %vm166_vm4, %v203_v0, 0.0  ;;  %v214_v3 = vsel %vm185_vm5, %v204_v1, 0.0 }
 0x117   :  { %v215_v4 = vadd.f32 %v214_v3, %v213_v2  ;;  %v207_v5 = vld.sshfl [vmem:[#allocation1 + $0x10] sm:$0xff pattern:$0x75316420]  ;;  %v208_v7 = vld.sshfl [vmem:[#allocation1 + $0x18] sm:$0xff pattern:$0x75316420] }
 0x118   :  { %v218_v8 = vsel %vm166_vm4, %v207_v5, 0.0  ;;  %v219_v9 = vsel %vm185_vm5, %v208_v7, 0.0 }
 0x119   :  { %216 = vadd.xlane.f32.xlu1 %v215_v4  ;;  %v220_v10 = vadd.f32 %v219_v9, %v218_v8 }
 0x11b   :  { %221 = vadd.xlane.f32.xlu2 %v220_v10 }
 0x127   :  { %263 = vperm.xlu0 %827, %v162_v11  }
 0x12f   :  { %318 = vperm.xlu0 %827, %v277_v12  }
 0x132   :  { %297 = vperm.xlu1 %828, %v276_v13  }
 0x137   :  { %381 = vperm.xlu0 %827, %v280_v14  }
 0x13a   :  { %368 = vperm.xlu1 %828, %v279_v15  }
 0x184   :  { %v189_v16 = vpop.xlane.xlu2 %188 }
 0x185   :  { %v195_v19 = vsel %vm166_vm4, %v189_v16, 0.0 }
 0x186   :  { %v194_v17 = vpop.xlane.xlu0 %193 }
 0x187   :  { %v196_v18 = vsel %vm166_vm4, %v194_v17, 0.0 }
 0x188   :  { %v197_v20 = vadd.f32 %v196_v18, %v195_v19 }
 0x18a   :  { %v226_v22 = vmul.f32 0.00390625, %v197_v20 }
 0x18c   :  { %v217_v21 = vpop.xlane.xlu1 %216  ;;  %v228_v27 = vmul.f32 %v226_v22, %v226_v22  ;;  %v246_v43 = vperm.slane %v226_v22, %v986_v6 }
 0x18d   :  { %v223_v24 = vsel %vm166_vm4, %v217_v21, 0.0 }
 0x18e   :  { %v222_v23 = vpop.xlane.xlu2 %221  ;;  %v248_v47 = vsub.f32 %v1019_v50, %v246_v43  ;;  %v249_v48 = vsub.f32 %v1022_v51, %v246_v43 }
 0x18f   :  { %v224_v25 = vsel %vm166_vm4, %v222_v23, 0.0 }
 0x190   :  { %v225_v26 = vadd.f32 %v224_v25, %v223_v24 }
 0x192   :  { %v227_v28 = vmul.f32 0.00390625, %v225_v26 }
 0x194   :  { %v229_v29 = vsub.f32 %v227_v28, %v228_v27 }
 0x196   :  { %v230_v30 = vadd.f32 1e-05, %v229_v29 }
 0x198   :  { %830 = vrsqrt.f32 %v230_v30  ;;  %vm237_vm7 = vweird.f32 %v230_v30 }
 0x199   :  { %v264_v44 = vpop.permute.xlu0 %263 }
 0x19a   :  { %v268_v52 = vperm.slane %v264_v44, %v986_v6 }
 0x19e   :  { %v831_v32 = vpop.eup %830 }
 0x19f   :  { %v232_v33 = vmul.f32 %v831_v32, %v230_v30  ;;  %vm238_vm6 = vweird.f32 %v831_v32 }
 0x1a0   :  { %vm239_vm8 = vmor %vm237_vm7, %vm238_vm6 }
 0x1a1   :  { %v233_v34 = vmul.f32 %v831_v32, %v232_v33  ;;  %v319_v12 = vpop.permute.xlu0 %318 }
 0x1a3   :  { %v234_v35 = vmul.f32 0.5, %v233_v34 }
 0x1a4   :  { %v298_v3 = vpop.permute.xlu1 %297 }
 0x1a5   :  { %v235_v36 = vsub.f32 1.5, %v234_v35 }
 0x1a7   :  { %v236_v39 = vmul.f32 %v831_v32, %v235_v36 }
 0x1a9   :  { %v240_v40 = vsel %vm239_vm8, %v831_v32, %v236_v39 }
 0x1aa   :  { %v241_v41 = vmul.f32 %v240_v40, %v161_v37 }
 0x1ac   :  { %252 = vperm.xlu2 %829, %v241_v41  }
 0x1b4   :  { %343 = vperm.xlu2 %829, %v278_v42  }
 0x206   :  { %v253_v45 = vpop.permute.xlu2 %252 }
 0x207   :  { %v257_v49 = vperm.slane %v253_v45, %v986_v6 }
 0x209   :  { %v259_v53 = vmul.f32 %v257_v49, %v248_v47  ;;  %v260_v54 = vmul.f32 %v257_v49, %v249_v48  ;;  %v369_v48 = vpop.permute.xlu1 %368 }
 0x20b   :  { %v270_v55 = vadd.f32 %v268_v52, %v259_v53  ;;  %v271_v56 = vadd.f32 %v268_v52, %v260_v54 }
 0x20d   :  { %v272_v57 = vmax.f32 %v270_v55, 0.0  ;;  %v273_v58 = vmax.f32 %v271_v56, 0.0 }
 0x20e   :  { %v344_v37 = vpop.permute.xlu2 %343 }
 0x20f   :  { %v274_v59 = vmul.f32 %v272_v57, %v1016_v46  ;;  %v275_v60 = vmul.f32 %v273_v58, %v1016_v46 }
 0x211   :  { %v283_v61 = vperm.slane %v274_v59, 0  ;;  %v284_v62 = vperm.slane %v274_v59, 4  ;;  %v285_v63 = vperm.slane %v275_v60, 0  ;;  %v286_v50 = vperm.slane %v275_v60, 4 }
 0x212   :  { %v304_v0 = vperm.slane %v274_v59, 1  ;;  %v305_v51 = vperm.slane %v274_v59, 5  ;;  %v306_v1 = vperm.slane %v275_v60, 1  ;;  %v307_v2 = vperm.slane %v275_v60, 5 }
 0x213   :  { %v291_v6 = vperm.slane %v283_v61, 0  ;;  %v292_v4 = vperm.slane %v284_v62, 0  ;;  %v293_v5 = vperm.slane %v285_v63, 0  ;;  %v294_v7 = vperm.slane %v286_v50, 0  ;;  %v382_v63 = vpop.permute.xlu0 %381 }
 0x214   :  { %v312_v8 = vperm.slane %v304_v0, 1  ;;  %v313_v9 = vperm.slane %v305_v51, 1  ;;  %v314_v10 = vperm.slane %v306_v1, 1  ;;  %v315_v11 = vperm.slane %v307_v2, 1 }
 0x215   :  { %v300_v13 = vmul.f32 %v298_v3, %v291_v6  ;;  %v301_v46 = vmul.f32 %v298_v3, %v292_v4  ;;  %v302_v14 = vmul.f32 %v298_v3, %v293_v5  ;;  %v303_v15 = vmul.f32 %v298_v3, %v294_v7 }
 0x216   :  { %v321_v16 = vmul.f32 %v319_v12, %v312_v8  ;;  %v322_v17 = vmul.f32 %v319_v12, %v313_v9  ;;  %v323_v18 = vmul.f32 %v319_v12, %v314_v10  ;;  %v324_v19 = vmul.f32 %v319_v12, %v315_v11 }
 0x217   :  { %v329_v20 = vperm.slane %v274_v59, 2  ;;  %v330_v21 = vperm.slane %v274_v59, 6  ;;  %v331_v22 = vperm.slane %v275_v60, 2  ;;  %v332_v23 = vperm.slane %v275_v60, 6 }
 0x218   :  { %v325_v24 = vadd.f32 %v321_v16, %v300_v13  ;;  %v326_v25 = vadd.f32 %v322_v17, %v301_v46  ;;  %v327_v26 = vadd.f32 %v323_v18, %v302_v14  ;;  %v328_v27 = vadd.f32 %v324_v19, %v303_v15  ;;  %v389_v17 = vld [vmem:[%s1204_s9] sm:$0xff]  ;;  %v465_v18 = vld [vmem:[%s1205_s10 + $0x10] sm:$0xff]  ;;  %v464_v19 = vld [vmem:[%s1205_s10 + $0x8] sm:$0xff] }
 0x219   :  { %v337_v28 = vperm.slane %v329_v20, 2  ;;  %v338_v29 = vperm.slane %v330_v21, 2  ;;  %v339_v30 = vperm.slane %v331_v22, 2  ;;  %v340_v32 = vperm.slane %v332_v23, 2 }
 0x21a   :  { %v354_v33 = vperm.slane %v274_v59, 3  ;;  %v355_v34 = vperm.slane %v274_v59, 7  ;;  %v356_v35 = vperm.slane %v275_v60, 3  ;;  %v357_v36 = vperm.slane %v275_v60, 7 }
 0x21b   :  { %v346_v39 = vmul.f32 %v344_v37, %v337_v28  ;;  %v347_v40 = vmul.f32 %v344_v37, %v338_v29  ;;  %v348_v41 = vmul.f32 %v344_v37, %v339_v30  ;;  %v349_v42 = vmul.f32 %v344_v37, %v340_v32  ;;  %v388_v37 = vld [vmem:[%s1203_s8] sm:$0xff] }
 0x21c   :  { %v362_v43 = vperm.slane %v354_v33, 3  ;;  %v363_v44 = vperm.slane %v355_v34, 3  ;;  %v364_v45 = vperm.slane %v356_v35, 3  ;;  %v365_v47 = vperm.slane %v357_v36, 3 }
 0x21d   :  { %v350_v49 = vadd.f32 %v346_v39, %v325_v24  ;;  %v351_v52 = vadd.f32 %v347_v40, %v326_v25  ;;  %v352_v53 = vadd.f32 %v348_v41, %v327_v26  ;;  %v353_v54 = vadd.f32 %v349_v42, %v328_v27  ;;  %v463_v42 = vld [vmem:[%s1205_s10] sm:$0xff] }
 0x21e   :  { %v371_v55 = vmul.f32 %v369_v48, %v362_v43  ;;  %v372_v56 = vmul.f32 %v369_v48, %v363_v44  ;;  %v373_v57 = vmul.f32 %v369_v48, %v364_v45  ;;  %v374_v58 = vmul.f32 %v369_v48, %v365_v47 }
 0x220   :  { %v375_v59 = vadd.f32 %v371_v55, %v350_v49  ;;  %v376_v60 = vadd.f32 %v372_v56, %v351_v52  ;;  %v377_v61 = vadd.f32 %v373_v57, %v352_v53  ;;  %v378_v62 = vadd.f32 %v374_v58, %v353_v54 }
 0x222   :  { %v386_v50 = vadd.f32 %v382_v63, %v377_v61  ;;  %v387_v0 = vadd.f32 %v382_v63, %v378_v62  ;;  %v384_v51 = vadd.f32 %v382_v63, %v375_v59  ;;  %v385_v1 = vadd.f32 %v382_v63, %v376_v60 }
 0x224   :  { %v392_v2 = vmul.f32 %v1009_v38, %v386_v50  ;;  %v393_v3 = vmul.f32 %v1005_v31, %v387_v0  ;;  %v390_v6 = vmul.f32 %v1009_v38, %v384_v51  ;;  %v391_v4 = vmul.f32 %v1005_v31, %v385_v1 }
 0x226   :  { %v399_v5 = vsel %vm394_vm9, %v393_v3, 0.0  ;;  %v395_v7 = vsel %vm394_vm9, %v391_v4, 0.0  ;;  %v404_v8 = vmul.f32 %v390_v6, %v390_v6  ;;  %v405_v9 = vmul.f32 %v391_v4, %v391_v4 }
 0x227   :  { %v400_v10 = vadd.f32 %v399_v5, %v392_v2  ;;  %v396_v11 = vadd.f32 %v395_v7, %v390_v6  ;;  %v407_v13 = vmul.f32 %v393_v3, %v393_v3  ;;  %v406_v14 = vmul.f32 %v392_v2, %v392_v2 }
 0x228   :  { %v408_v12 = vsel %vm394_vm9, %v405_v9, 0.0 }
 0x229   :  { %401 = vadd.xlane.f32.xlu1 %v400_v10  ;;  %397 = vadd.xlane.f32.xlu2 %v396_v11  ;;  %v409_v46 = vadd.f32 %v408_v12, %v404_v8  ;;  %v412_v15 = vsel %vm394_vm9, %v407_v13, 0.0 }
 0x22a   :  { %v413_v16 = vadd.f32 %v412_v15, %v406_v14 }
 0x22b   :  { %410 = vadd.xlane.f32.xlu0 %v409_v46 }
 0x231   :  { %414 = vadd.xlane.f32.xlu2 %v413_v16 }
 0x23f   :  { %448 = vperm.xlu0 %827, %v389_v17  }
 0x247   :  { %503 = vperm.xlu0 %827, %v465_v18  }
 0x249   :  { %476 = vperm.xlu2 %829, %v464_v19  }
 0x29c   :  { %v402_v20 = vpop.xlane.xlu1 %401  ;;  %v398_v21 = vpop.xlane.xlu2 %397 }
 0x29d   :  { %v403_v22 = vadd.f32 %v402_v20, %v398_v21 }
 0x29e   :  { %v411_v24 = vpop.xlane.xlu0 %410 }
 0x29f   :  { %v417_v23 = vmul.f32 0.00390625, %v403_v22 }
 0x2a1   :  { %v419_v27 = vmul.f32 %v417_v23, %v417_v23  ;;  %v433_v43 = vsub.f32 %v390_v6, %v417_v23  ;;  %v434_v44 = vsub.f32 %v391_v4, %v417_v23  ;;  %v435_v45 = vsub.f32 %v392_v2, %v417_v23 }
 0x2a2   :  { %v436_v47 = vsub.f32 %v393_v3, %v417_v23 }
 0x2a4   :  { %v415_v25 = vpop.xlane.xlu2 %414 }
 0x2a5   :  { %v416_v26 = vadd.f32 %v415_v25, %v411_v24 }
 0x2a7   :  { %v418_v28 = vmul.f32 0.00390625, %v416_v26 }
 0x2a9   :  { %v420_v29 = vsub.f32 %v418_v28, %v419_v27 }
 0x2ab   :  { %v421_v30 = vadd.f32 1e-05, %v420_v29 }
 0x2ac   :  { %v477_v51 = vpop.permute.xlu2 %476 }
 0x2ad   :  { %832 = vrsqrt.f32 %v421_v30  ;;  %vm428_vm11 = vweird.f32 %v421_v30 }
 0x2b1   :  { %v449_v54 = vpop.permute.xlu0 %448 }
 0x2b3   :  { %v833_v32 = vpop.eup %832 }
 0x2b4   :  { %v423_v33 = vmul.f32 %v833_v32, %v421_v30  ;;  %vm429_vm10 = vweird.f32 %v833_v32 }
 0x2b5   :  { %vm430_vm12 = vmor %vm428_vm11, %vm429_vm10 }
 0x2b6   :  { %v424_v34 = vmul.f32 %v833_v32, %v423_v33 }
 0x2b8   :  { %v425_v35 = vmul.f32 0.5, %v424_v34 }
 0x2b9   :  { %v504_v5 = vpop.permute.xlu0 %503 }
 0x2ba   :  { %v426_v36 = vsub.f32 1.5, %v425_v35  ;;  %v536_v35 = vld [vmem:[%s1208_s13] sm:$0xff]  ;;  %s1228_s13 = sld [smem:[#allocation5_spill]] }
 0x2bc   :  { %v427_v39 = vmul.f32 %v833_v32, %v426_v36  ;;  %v583_v36 = vld [vmem:[%s1209_s14] sm:$0xf] }
 0x2be   :  { %v431_v40 = vsel %vm430_vm12, %v833_v32, %v427_v39  ;;  %v587_v39 = vld [vmem:[%s1209_s14 + $0x10] sm:$0xf] }
 0x2bf   :  { %v432_v41 = vmul.f32 %v431_v40, %v388_v37  ;;  %v585_v37 = vld [vmem:[%s1209_s14 + $0x8] sm:$0xf]  ;;  %v588_v40 = vld [vmem:[%s1209_s14 + $0x14] sm:$0xf] }
 0x2c1   :  { %439 = vperm.xlu1 %828, %v432_v41   ;;  %v590_v41 = vld [vmem:[%s1209_s14 + $0x1c] sm:$0xf] }
 0x2c9   :  { %469 = vperm.xlu1 %828, %v463_v42   ;;  %v591_v42 = vld [vmem:[%s1210_s15] sm:$0xf] }
 0x333   :  { %v440_v48 = vpop.permute.xlu1 %439 }
 0x334   :  { %v442_v49 = vmul.f32 %v440_v48, %v433_v43  ;;  %v443_v52 = vmul.f32 %v440_v48, %v434_v44  ;;  %v444_v53 = vmul.f32 %v440_v48, %v435_v45  ;;  %v445_v55 = vmul.f32 %v440_v48, %v436_v47 }
 0x336   :  { %v451_v56 = vadd.f32 %v449_v54, %v442_v49  ;;  %v452_v57 = vadd.f32 %v449_v54, %v443_v52  ;;  %v453_v58 = vadd.f32 %v449_v54, %v444_v53  ;;  %v454_v62 = vadd.f32 %v449_v54, %v445_v55 }
 0x338   :  { %v455_v59 = vmax.f32 %v451_v56, 0.0  ;;  %v457_v60 = vmax.f32 %v453_v58, 0.0  ;;  %v456_v61 = vmax.f32 %v452_v57, 0.0  ;;  %v458_v6 = vmax.f32 %v454_v62, 0.0  ;;  %v535_v62 = vld [vmem:[%s1207_s12] sm:$0xff] }
 0x33a   :  { %v459_v63 = vmul.f32 %v1009_v38, %v455_v59  ;;  %v461_v50 = vmul.f32 %v1009_v38, %v457_v60  ;;  %v460_v0 = vmul.f32 %v1005_v31, %v456_v61  ;;  %v462_v4 = vmul.f32 %v1005_v31, %v458_v6  ;;  %v466_v38 = vld [vmem:[%s1206_s11] sm:$0xff] }
 0x33b   :  { %v470_v31 = vpop.permute.xlu1 %469 }
 0x33c   :  { %v481_v1 = vmul.f32 %v477_v51, %v461_v50  ;;  %v480_v2 = vmul.f32 %v477_v51, %v460_v0  ;;  %v479_v3 = vmul.f32 %v477_v51, %v459_v63  ;;  %v507_v7 = vmul.f32 %v504_v5, %v460_v0 }
 0x33d   :  { %v506_v8 = vmul.f32 %v504_v5, %v459_v63  ;;  %v482_v9 = vmul.f32 %v477_v51, %v462_v4  ;;  %v509_v10 = vmul.f32 %v504_v5, %v462_v4  ;;  %v508_v11 = vmul.f32 %v504_v5, %v461_v50  ;;  %v584_v51 = vld [vmem:[%s1209_s14 + $0x4] sm:$0xf] }
 0x33e   :  { %491 = vrot.lane.b32.xlu1 %v481_v1, %s866_s30  ;;  %489 = vrot.lane.b32.xlu0 %v480_v2, %s866_s30  ;;  %v472_v18 = vmul.f32 %v470_v31, %v459_v63  ;;  %v473_v22 = vmul.f32 %v470_v31, %v461_v50  ;;  %v586_v1 = vld [vmem:[%s1209_s14 + $0xc] sm:$0xf]  ;;  %v589_v2 = vld [vmem:[%s1209_s14 + $0x18] sm:$0xf] }
 0x33f   :  { %487 = vrot.lane.b32.xlu2 %v479_v3, %s866_s30 }
 0x346   :  { %516 = vrot.lane.b32.xlu1 %v507_v7, %s867_s22  ;;  %514 = vrot.lane.b32.xlu0 %v506_v8, %s867_s22 }
 0x347   :  { %493 = vrot.lane.b32.xlu2 %v482_v9, %s866_s30 }
 0x34e   :  { %530 = vperm.xlu1 %828, %v466_v38   ;;  %520 = vrot.lane.b32.xlu0 %v509_v10, %s867_s22 }
 0x34f   :  { %518 = vrot.lane.b32.xlu2 %v508_v11, %s867_s22 }
 0x399   :  { %v488_v12 = vpop.permute.xlu2 %487 }
 0x3a1   :  { %v494_v14 = vpop.permute.xlu2 %493 }
 0x3a9   :  { %v519_v23 = vpop.permute.xlu2 %518 }
 0x3b0   :  { %v492_v13 = vpop.permute.xlu1 %491  ;;  %v490_v46 = vpop.permute.xlu0 %489 }
 0x3b1   :  { %v495_v17 = vsel %vm117_vm1, %v488_v12, %v490_v46  ;;  %v496_v20 = vsel %vm117_vm1, %v492_v13, %v494_v14 }
 0x3b2   :  { %v499_v21 = vadd.f32 %v495_v17, %v472_v18  ;;  %v500_v25 = vadd.f32 %v496_v20, %v473_v22 }
 0x3b8   :  { %v517_v15 = vpop.permute.xlu1 %516  ;;  %v515_v16 = vpop.permute.xlu0 %514 }
 0x3b9   :  { %v522_v19 = vsel %vm143_vm3, %v515_v16, %v517_v15 }
 0x3ba   :  { %v526_v24 = vadd.f32 %v522_v19, %v499_v21 }
 0x3c0   :  { %v531_v26 = vpop.permute.xlu1 %530  ;;  %v521_v27 = vpop.permute.xlu0 %520 }
 0x3c1   :  { %v533_v28 = vadd.f32 %v531_v26, %v526_v24  ;;  %v523_v29 = vsel %vm143_vm3, %v519_v23, %v521_v27 }
 0x3c2   :  { %v527_v30 = vadd.f32 %v523_v29, %v500_v25 }
 0x3c3   :  { %537 = vadd.xlane.f32.xlu2 %v533_v28  ;;  %v542_v32 = vmul.f32 %v533_v28, %v533_v28 }
 0x3c4   :  { %v534_v33 = vadd.f32 %v531_v26, %v527_v30 }
 0x3c5   :  { %544 = vadd.xlane.f32.xlu1 %v542_v32 }
 0x3c6   :  { %539 = vadd.xlane.f32.xlu0 %v534_v33  ;;  %v543_v34 = vmul.f32 %v534_v33, %v534_v33 }
 0x3cb   :  { %546 = vadd.xlane.f32.xlu2 %v543_v34 }
 0x3de   :  { %576 = vperm.xlu1 %828, %v536_v35  }
 0x3e3   :  { %596 = vperm.xlu2 %829, %v583_v36  }
 0x3e6   :  { %616 = vperm.xlu1 %828, %v585_v37  }
 0x3eb   :  { %638 = vperm.xlu2 %829, %v587_v39  }
 0x3ee   :  { %649 = vperm.xlu1 %828, %v588_v40  }
 0x3f3   :  { %671 = vperm.xlu2 %829, %v590_v41  }
 0x3f6   :  { %680 = vperm.xlu1 %828, %v591_v42  }
 0x436   :  { %v538_v43 = vpop.xlane.xlu2 %537 }
 0x438   :  { %v545_v48 = vpop.xlane.xlu1 %544 }
 0x439   :  { %v540_v44 = vpop.xlane.xlu0 %539 }
 0x43a   :  { %v541_v45 = vadd.f32 %v540_v44, %v538_v43 }
 0x43c   :  { %v549_v47 = vmul.f32 0.00390625, %v541_v45 }
 0x43e   :  { %v547_v49 = vpop.xlane.xlu2 %546  ;;  %v551_v53 = vmul.f32 %v549_v47, %v549_v47  ;;  %v565_v3 = vsub.f32 %v533_v28, %v549_v47  ;;  %v566_v6 = vsub.f32 %v534_v33, %v549_v47 }
 0x43f   :  { %v548_v52 = vadd.f32 %v547_v49, %v545_v48 }
 0x441   :  { %v550_v54 = vmul.f32 0.00390625, %v548_v52 }
 0x443   :  { %v552_v55 = vsub.f32 %v550_v54, %v551_v53 }
 0x445   :  { %v553_v56 = vadd.f32 1e-05, %v552_v55 }
 0x446   :  { %v597_v31 = vpop.permute.xlu2 %596 }
 0x447   :  { %834 = vrsqrt.f32 %v553_v56  ;;  %vm560_vm14 = vweird.f32 %v553_v56 }
 0x44d   :  { %v835_v57 = vpop.eup %834 }
 0x44e   :  { %v555_v58 = vmul.f32 %v835_v57, %v553_v56  ;;  %vm561_vm13 = vweird.f32 %v835_v57  ;;  %v639_v32 = vpop.permute.xlu2 %638 }
 0x44f   :  { %vm562_vm15 = vmor %vm560_vm14, %vm561_vm13 }
 0x450   :  { %v556_v59 = vmul.f32 %v835_v57, %v555_v58  ;;  %v577_v4 = vpop.permute.xlu1 %576 }
 0x452   :  { %v557_v60 = vmul.f32 0.5, %v556_v59 }
 0x454   :  { %v558_v61 = vsub.f32 1.5, %v557_v60 }
 0x456   :  { %v559_v63 = vmul.f32 %v835_v57, %v558_v61 }
 0x458   :  { %v563_v50 = vsel %vm562_vm15, %v835_v57, %v559_v63  ;;  %v617_v20 = vpop.permute.xlu1 %616 }
 0x459   :  { %v564_v0 = vmul.f32 %v563_v50, %v535_v62  ;;  %v672_v62 = vpop.permute.xlu2 %671 }
 0x45b   :  { %569 = vperm.xlu0 %827, %v564_v0  }
 0x460   :  { %v650_v45 = vpop.permute.xlu1 %649 }
 0x463   :  { %605 = vperm.xlu0 %827, %v584_v51  }
 0x46b   :  { %627 = vperm.xlu0 %827, %v586_v1  }
 0x473   :  { %660 = vperm.xlu0 %827, %v589_v2  }
 0x4cd   :  { %v570_v5 = vpop.permute.xlu0 %569 }
 0x4ce   :  { %v572_v7 = vmul.f32 %v570_v5, %v565_v3  ;;  %v573_v8 = vmul.f32 %v570_v5, %v566_v6  ;;  %v681_v3 = vpop.permute.xlu1 %680 }
 0x4d0   :  { %v579_v9 = vadd.f32 %v577_v4, %v572_v7  ;;  %v580_v38 = vadd.f32 %v577_v4, %v573_v8 }
 0x4d2   :  { %v581_v10 = vmax.f32 %v579_v9, 0.0  ;;  %v582_v11 = vmax.f32 %v580_v38, 0.0 }
 0x4d4   :  { %v592_v12 = vperm.slane %v581_v10, 0  ;;  %v593_v13 = vperm.slane %v582_v11, 0  ;;  %v601_v46 = vperm.slane %v581_v10, 1  ;;  %v602_v14 = vperm.slane %v582_v11, 1 }
 0x4d5   :  { %v606_v15 = vpop.permute.xlu0 %605  ;;  %v612_v21 = vperm.slane %v581_v10, 2  ;;  %v613_v22 = vperm.slane %v582_v11, 2  ;;  %v623_v25 = vperm.slane %v581_v10, 3  ;;  %v624_v26 = vperm.slane %v582_v11, 3 }
 0x4d6   :  { %v599_v16 = vmul.f32 %v597_v31, %v592_v12  ;;  %v600_v17 = vmul.f32 %v597_v31, %v593_v13  ;;  %v608_v18 = vmul.f32 %v606_v15, %v601_v46  ;;  %v609_v19 = vmul.f32 %v606_v15, %v602_v14  ;;  %v742_v31 = vld [vmem:[%s1213_s18 + $0x4] sm:$0xf]  ;;  %v743_v12 = vld [vmem:[%s1213_s18 + $0x8] sm:$0xf]  ;;  %v686_v13 = vld [vmem:[%s1212_s17] sm:$0xf] }
 0x4d7   :  { %v619_v27 = vmul.f32 %v617_v20, %v612_v21  ;;  %v620_v28 = vmul.f32 %v617_v20, %v613_v22  ;;  %v634_v29 = vperm.slane %v581_v10, 4  ;;  %v635_v30 = vperm.slane %v582_v11, 4  ;;  %v744_v46 = vld [vmem:[%s1213_s18 + $0xc] sm:$0xf] }
 0x4d8   :  { %v610_v23 = vadd.f32 %v608_v18, %v599_v16  ;;  %v611_v24 = vadd.f32 %v609_v19, %v600_v17  ;;  %v645_v39 = vperm.slane %v581_v10, 5  ;;  %v646_v40 = vperm.slane %v582_v11, 5 }
 0x4d9   :  { %v641_v43 = vmul.f32 %v639_v32, %v634_v29  ;;  %v642_v44 = vmul.f32 %v639_v32, %v635_v30  ;;  %v656_v49 = vperm.slane %v581_v10, 6  ;;  %v657_v52 = vperm.slane %v582_v11, 6 }
 0x4da   :  { %v621_v34 = vadd.f32 %v619_v27, %v610_v23  ;;  %v622_v35 = vadd.f32 %v620_v28, %v611_v24  ;;  %v652_v53 = vmul.f32 %v650_v45, %v645_v39  ;;  %v653_v54 = vmul.f32 %v650_v45, %v646_v40  ;;  %v745_v40 = vld [vmem:[%s1214_s19] sm:$0xf] }
 0x4db   :  { %v667_v55 = vperm.slane %v581_v10, 7  ;;  %v668_v56 = vperm.slane %v582_v11, 7  ;;  %v741_v11 = vld [vmem:[%s1213_s18] sm:$0xf] }
 0x4dd   :  { %v628_v33 = vpop.permute.xlu0 %627  ;;  %v674_v0 = vmul.f32 %v672_v62, %v667_v55  ;;  %v675_v51 = vmul.f32 %v672_v62, %v668_v56 }
 0x4de   :  { %v630_v36 = vmul.f32 %v628_v33, %v623_v25  ;;  %v631_v37 = vmul.f32 %v628_v33, %v624_v26 }
 0x4e0   :  { %v632_v41 = vadd.f32 %v630_v36, %v621_v34  ;;  %v633_v42 = vadd.f32 %v631_v37, %v622_v35  ;;  %v685_v35 = vld [vmem:[%s1211_s16] sm:$0xf]  ;;  %s869_s16 = smov [#allocation2]  }
 0x4e1   :  { %s803_s19 = sshll.u32 %s869_s16, 4  ;;  %s804_s19 = int_to_ptr.vmem [resolvable:$true] %s803_s19 }
 0x4e2   :  { %v643_v47 = vadd.f32 %v641_v43, %v632_v41  ;;  %v644_v48 = vadd.f32 %v642_v44, %v633_v42  ;;  %v66_v43 = vld [vmem:[%s1228_s13] sm:$0xf]  ;;  %v67_v44 = vld [vmem:[%s1228_s13 + $0x4] sm:$0xf] }
 0x4e3   :  { %v755_v45 = vperm.slane %v66_v43, 1 }
 0x4e4   :  { %v654_v58 = vadd.f32 %v652_v53, %v643_v47  ;;  %v655_v59 = vadd.f32 %v653_v54, %v644_v48  ;;  %v756_v47 = vperm.slane %v67_v44, 1  ;;  %v766_v53 = vperm.slane %v66_v43, 2 }
 0x4e5   :  { %v661_v57 = vpop.permute.xlu0 %660  ;;  %v767_v54 = vperm.slane %v67_v44, 2 }
 0x4e6   :  { %v663_v60 = vmul.f32 %v661_v57, %v656_v49  ;;  %v664_v61 = vmul.f32 %v661_v57, %v657_v52  ;;  %v746_v49 = vperm.slane %v66_v43, 0  ;;  %v747_v52 = vperm.slane %v67_v44, 0 }
 0x4e7   :  { %v777_v57 = vperm.slane %v66_v43, 3 }
 0x4e8   :  { %v665_v63 = vadd.f32 %v663_v60, %v654_v58  ;;  %v666_v50 = vadd.f32 %v664_v61, %v655_v59  ;;  %v778_v58 = vperm.slane %v67_v44, 3 }
 0x4ea   :  { %v676_v1 = vadd.f32 %v674_v0, %v665_v63  ;;  %v677_v2 = vadd.f32 %v675_v51, %v666_v50 }
 0x4ec   :  { %v1145_v6 = vadd.f32 %v681_v3, %v677_v2  ;;  %v1147_v4 = vadd.f32 %v681_v3, %v676_v1 }
 0x4ee   :  { %v690_v5 = vsel %vm166_vm4, %v1145_v6, 0.0  ;;  %v687_v7 = vsel %vm166_vm4, %v1147_v4, 0.0  ;;  %v696_v8 = vmul.f32 %v1147_v4, %v1147_v4  ;;  %v697_v38 = vmul.f32 %v1145_v6, %v1145_v6 }
 0x4ef   :  { %691 = vadd.xlane.f32.xlu2 %v690_v5  ;;  %688 = vadd.xlane.f32.xlu0 %v687_v7 }
 0x4f0   :  { %v698_v9 = vsel %vm166_vm4, %v696_v8, 0.0  ;;  %v701_v10 = vsel %vm166_vm4, %v697_v38, 0.0 }
 0x4f1   :  { %699 = vadd.xlane.f32.xlu1 %v698_v9 }
 0x4f7   :  { %702 = vadd.xlane.f32.xlu0 %v701_v10 }
 0x507   :  { %750 = vperm.xlu2 %829, %v741_v11  }
 0x50a   :  { %759 = vperm.xlu1 %828, %v742_v31  }
 0x50b   :  { %770 = vperm.xlu0 %827, %v743_v12  }
 0x512   :  { %734 = vperm.xlu1 %828, %v686_v13  }
 0x513   :  { %781 = vperm.xlu0 %827, %v744_v46  }
 0x562   :  { %v692_v14 = vpop.xlane.xlu2 %691  ;;  %v689_v15 = vpop.xlane.xlu0 %688 }
 0x563   :  { %v694_v16 = vsel %vm166_vm4, %v692_v14, 0.0  ;;  %v693_v17 = vsel %vm166_vm4, %v689_v15, 0.0 }
 0x564   :  { %v695_v18 = vadd.f32 %v694_v16, %v693_v17  ;;  %v700_v19 = vpop.xlane.xlu1 %699 }
 0x565   :  { %v704_v22 = vsel %vm166_vm4, %v700_v19, 0.0 }
 0x566   :  { %v707_v20 = vmul.f32 0.00390625, %v695_v18 }
 0x568   :  { %v709_v25 = vmul.f32 %v707_v20, %v707_v20  ;;  %v723_v61 = vsub.f32 %v1147_v4, %v707_v20  ;;  %v724_v62 = vsub.f32 %v1145_v6, %v707_v20 }
 0x56a   :  { %v703_v21 = vpop.xlane.xlu0 %702  ;;  %v751_v42 = vpop.permute.xlu2 %750 }
 0x56b   :  { %v705_v23 = vsel %vm166_vm4, %v703_v21, 0.0  ;;  %v753_v59 = vmul.f32 %v751_v42, %v746_v49  ;;  %v754_v60 = vmul.f32 %v751_v42, %v747_v52 }
 0x56c   :  { %v706_v24 = vadd.f32 %v705_v23, %v704_v22 }
 0x56e   :  { %v708_v26 = vmul.f32 0.00390625, %v706_v24 }
 0x570   :  { %v710_v27 = vsub.f32 %v708_v26, %v709_v25 }
 0x572   :  { %v711_v28 = vadd.f32 1e-05, %v710_v27 }
 0x574   :  { %836 = vrsqrt.f32 %v711_v28  ;;  %vm718_vm1 = vweird.f32 %v711_v28 }
 0x57a   :  { %v837_v29 = vpop.eup %836 }
 0x57b   :  { %v713_v30 = vmul.f32 %v837_v29, %v711_v28  ;;  %vm719_vm0 = vweird.f32 %v837_v29 }
 0x57c   :  { %vm720_vm2 = vmor %vm718_vm1, %vm719_vm0  ;;  %v760_v48 = vpop.permute.xlu1 %759 }
 0x57d   :  { %v714_v32 = vmul.f32 %v837_v29, %v713_v30  ;;  %v771_v41 = vpop.permute.xlu0 %770  ;;  %v762_v55 = vmul.f32 %v760_v48, %v755_v45  ;;  %v763_v56 = vmul.f32 %v760_v48, %v756_v47 }
 0x57e   :  { %v773_v63 = vmul.f32 %v771_v41, %v766_v53  ;;  %v774_v50 = vmul.f32 %v771_v41, %v767_v54 }
 0x57f   :  { %v715_v33 = vmul.f32 0.5, %v714_v32  ;;  %v764_v1 = vadd.f32 %v762_v55, %v753_v59  ;;  %v765_v2 = vadd.f32 %v763_v56, %v754_v60 }
 0x581   :  { %v716_v34 = vsub.f32 1.5, %v715_v33  ;;  %v775_v38 = vadd.f32 %v773_v63, %v764_v1  ;;  %v776_v10 = vadd.f32 %v774_v50, %v765_v2 }
 0x583   :  { %v717_v36 = vmul.f32 %v837_v29, %v716_v34 }
 0x584   :  { %v735_v9 = vpop.permute.xlu1 %734 }
 0x585   :  { %v721_v37 = vsel %vm720_vm2, %v837_v29, %v717_v36  ;;  %v782_v0 = vpop.permute.xlu0 %781 }
 0x586   :  { %v722_v39 = vmul.f32 %v721_v37, %v685_v35  ;;  %v784_v7 = vmul.f32 %v782_v0, %v777_v57  ;;  %v785_v8 = vmul.f32 %v782_v0, %v778_v58 }
 0x588   :  { %727 = vperm.xlu2 %829, %v722_v39   ;;  %v786_v12 = vadd.f32 %v784_v7, %v775_v38  ;;  %v787_v13 = vadd.f32 %v785_v8, %v776_v10 }
 0x590   :  { %790 = vperm.xlu2 %829, %v745_v40  }
 0x5e2   :  { %v728_v51 = vpop.permute.xlu2 %727 }
 0x5e3   :  { %v730_v3 = vmul.f32 %v728_v51, %v723_v61  ;;  %v731_v5 = vmul.f32 %v728_v51, %v724_v62 }
 0x5e5   :  { %v737_v11 = vadd.f32 %v735_v9, %v730_v3  ;;  %v738_v31 = vadd.f32 %v735_v9, %v731_v5 }
 0x5e7   :  { %v739_v6 = vmax.f32 %v737_v11, 0.0  ;;  %v740_v46 = vmax.f32 %v738_v31, 0.0 }
 0x5ea   :  { %v791_v4 = vpop.permute.xlu2 %790 }
 0x5eb   :  { %v793_v14 = vadd.f32 %v791_v4, %v786_v12  ;;  %v794_v15 = vadd.f32 %v791_v4, %v787_v13 }
 0x5ed   :  { %v795_v16 = vadd.f32 %v793_v14, %v739_v6  ;;  %v796_v17 = vadd.f32 %v794_v15, %v740_v46 }
 0x5ef   :  { %797 = vst [vmem:[#allocation2] sm:$0xf] %v795_v16 }
 0x5f0   :  { %798 = vst [vmem:[#allocation2 + $0x4] sm:$0xf] %v796_v17 }
 0x5f1   :  { %811 = dma.vmem_to_hbm [thread:$0]  %s804_s19, 128, %s806_s2, [#allocation3], %s870_s25, %s870_s25, %s871_s3  }
 0x5f2   :  { %862 = dma.done.wait [#allocation3], 128  }
 0x5f3   :  { %863 = vsyncadd [#allocation3], 4294967168 }
 0x5f4   :  { %816 = vsyncpa [#allocation3], 1 }

</bundles_post_ra>
